<compile_context>
chip_gen: v7x
topology: tpu7x:2x2x1
jax: 0.10.0
libtpu: 0.0.40
codegen_flags: <defaults>
</compile_context>

<pallas_src>
import numpy as np
import jax
import jax.numpy as jnp
from jax.experimental import pallas as pl
from jax.experimental.pallas import tpu as pltpu

# ----------------------------- config (opts) ---------------------------------
DIM = 32                 # opts.satbench_dim
N_MLP_LAYERS = 2         # opts.satbench_n_mlp_layers (kernel implements 2-layer MLPs)
N_ITERATIONS = 2         # opts.satbench_n_iterations
ACTIVATION = "relu"      # opts.satbench_activation

V_SIZE = 8               # number of variables
C_SIZE = 6               # number of clauses
N_EDGES = 24             # VCG edges (variable occurrences in clauses)

_VMEM = pl.BlockSpec(memory_space=pltpu.MemorySpace.VMEM)   # whole-array block in VMEM


# ------------------------------ fused Pallas kernel ---------------------------
def _gin_vcg_kernel(ap_ref, an_ref, apT_ref, anT_ref,           # adjacencies
                    v0_ref, c0_ref,                             # initial embeddings
                    w1v_ref, b1v_ref, w2v_ref, b2v_ref,         # fused v2c msg MLP (p|n)
                    w1c_ref, b1c_ref, w2c_ref, b2c_ref,         # fused c2v msg MLP (p|n)
                    uc1a_ref, uc1bc_ref, ucb1_ref, uc2_ref, ucb2_ref,   # c_update
                    uv1a_ref, uv1bc_ref, uvb1_ref, uv2_ref, uvb2_ref,   # v_update
                    v_out_ref, c_out_ref):
    V, dim = v0_ref.shape
    C = c0_ref.shape[0]
    n_iter = v_out_ref.shape[1] // dim

    # Load everything once (resident for the whole unrolled loop).
    A_p, A_n = ap_ref[...], an_ref[...]
    A_pT, A_nT = apT_ref[...], anT_ref[...]
    w1v, w2v = w1v_ref[...], w2v_ref[...]
    w1c, w2c = w1c_ref[...], w2c_ref[...]
    uc1a, uc1bc, uc2 = uc1a_ref[...], uc1bc_ref[...], uc2_ref[...]
    uv1a, uv1bc, uv2 = uv1a_ref[...], uv1bc_ref[...], uv2_ref[...]

    # Hoist bias broadcasts out of the unrolled loop (JAX does not CSE them).
    b1v = jnp.broadcast_to(b1v_ref[...], (V, 2 * dim))
    b2v = jnp.broadcast_to(b2v_ref[...], (V, 2 * dim))
    b1c = jnp.broadcast_to(b1c_ref[...], (C, 2 * dim))
    b2c = jnp.broadcast_to(b2c_ref[...], (C, 2 * dim))
    ucb1 = jnp.broadcast_to(ucb1_ref[...], (C, dim))
    ucb2 = jnp.broadcast_to(ucb2_ref[...], (C, dim))
    uvb1 = jnp.broadcast_to(uvb1_ref[...], (V, dim))
    uvb2 = jnp.broadcast_to(uvb2_ref[...], (V, dim))

    v_emb = v0_ref[...]
    c_emb = c0_ref[...]
    v_outs, c_outs = [], []

    for _ in range(n_iter):                       # static unroll (N_ITERATIONS)
        # --- polarity-fused message MLPs on the OLD embeddings ---------------
        # v2c: [V, 2D] slab = [MLP_p(v_emb) | MLP_n(v_emb)]
        hv = jnp.maximum(jnp.dot(v_emb, w1v, preferred_element_type=jnp.float32) + b1v, 0.0)
        feat_v2c = jnp.dot(hv, w2v, preferred_element_type=jnp.float32) + b2v
        # c2v: [C, 2D] slab = [MLP_p(c_emb) | MLP_n(c_emb)]
        hc = jnp.maximum(jnp.dot(c_emb, w1c, preferred_element_type=jnp.float32) + b1c, 0.0)
        feat_c2v = jnp.dot(hc, w2c, preferred_element_type=jnp.float32) + b2c

        # --- edge aggregation: dense adjacency matmuls == gather+scatter_sum -
        aggr_c = jnp.concatenate(
            [jnp.dot(A_p, feat_v2c[:, :dim], preferred_element_type=jnp.float32),
             jnp.dot(A_n, feat_v2c[:, dim:], preferred_element_type=jnp.float32)],
            axis=1)                                                   # [C, 2D]
        aggr_v = jnp.concatenate(
            [jnp.dot(A_pT, feat_c2v[:, :dim], preferred_element_type=jnp.float32),
             jnp.dot(A_nT, feat_c2v[:, dim:], preferred_element_type=jnp.float32)],
            axis=1)                                                   # [V, 2D]

        # --- clause update: MLP(concat(c_emb, p_aggr, n_aggr)) ---------------
        h = jnp.maximum(jnp.dot(c_emb, uc1a, preferred_element_type=jnp.float32)
                        + jnp.dot(aggr_c, uc1bc, preferred_element_type=jnp.float32)
                        + ucb1, 0.0)
        c_emb = jnp.dot(h, uc2, preferred_element_type=jnp.float32) + ucb2

        # --- variable update (uses OLD v_emb, matching the reference) --------
        h = jnp.maximum(jnp.dot(v_emb, uv1a, preferred_element_type=jnp.float32)
                        + jnp.dot(aggr_v, uv1bc, preferred_element_type=jnp.float32)
                        + uvb1, 0.0)
        v_emb = jnp.dot(h, uv2, preferred_element_type=jnp.float32) + uvb2

        c_outs.append(c_emb)
        v_outs.append(v_emb)

    # Single lane-dense store per output (all iterations packed on the lane axis).
    v_out_ref[...] = jnp.concatenate(v_outs, axis=1)
    c_out_ref[...] = jnp.concatenate(c_outs, axis=1)


# ------------------------------ parameter setup --------------------------------
def _init_mlp(key, in_dim, hid_dim, out_dim):
    k1, k2 = jax.random.split(key)
    s1 = 1.0 / np.sqrt(in_dim)
    s2 = 1.0 / np.sqrt(hid_dim)
    return {
        "w1": jax.random.normal(k1, (in_dim, hid_dim), jnp.float32) * s1,
        "b1": jnp.zeros((1, hid_dim), jnp.float32),
        "w2": jax.random.normal(k2, (hid_dim, out_dim), jnp.float32) * s2,
        "b2": jnp.zeros((1, out_dim), jnp.float32),
    }


def init_params(key, dim):
    keys = jax.random.split(key, 6)
    return {
        "p_v2c": _init_mlp(keys[0], dim, dim, dim),
        "n_v2c": _init_mlp(keys[1], dim, dim, dim),
        "p_c2v": _init_mlp(keys[2], dim, dim, dim),
        "n_c2v": _init_mlp(keys[3], dim, dim, dim),
        "c_update": _init_mlp(keys[4], 3 * dim, dim, dim),
        "v_update": _init_mlp(keys[5], 3 * dim, dim, dim),
    }


def _fuse_msg_pair(p, n, dim):
    """Fuse positive/negative message MLPs sharing the same input:
    W1 -> [D, 2D], block-diagonal W2 -> [2D, 2D]."""
    w1 = jnp.concatenate([p["w1"], n["w1"]], axis=1)
    b1 = jnp.concatenate([p["b1"], n["b1"]], axis=1)
    w2 = jnp.zeros((2 * dim, 2 * dim), jnp.float32)
    w2 = w2.at[:dim, :dim].set(p["w2"]).at[dim:, dim:].set(n["w2"])
    b2 = jnp.concatenate([p["b2"], n["b2"]], axis=1)
    return w1, b1, w2, b2


def fuse_params(params, dim):
    """Build the fused/split weight arrays consumed by the single kernel (done once)."""
    fused = {}
    fused["msg_v2c"] = _fuse_msg_pair(params["p_v2c"], params["n_v2c"], dim)
    fused["msg_c2v"] = _fuse_msg_pair(params["p_c2v"], params["n_c2v"], dim)
    for name in ("c_update", "v_update"):
        p = params[name]
        fused[name] = (p["w1"][:dim],        # U1a  : self part
                       p["w1"][dim:],        # U1bc : [2D, D] aggregated-slab part
                       p["b1"], p["w2"], p["b2"])
    return fused


# ------------------------------- forward passes --------------------------------
def build_adjacency_np(v_edge_index, c_edge_index, sel_edge_index, v_size, c_size):
    """A[c, v] = number of selected edges connecting clause c and variable v (host-side)."""
    A = np.zeros((c_size, v_size), dtype=np.float32)
    np.add.at(A, (c_edge_index[sel_edge_index], v_edge_index[sel_edge_index]), 1.0)
    return A


def gin_vcg_forward_pallas(fused, A_p, A_n, A_pT, A_nT, v_emb, c_emb, n_iterations):
    dim = v_emb.shape[1]
    args = (A_p, A_n, A_pT, A_nT, v_emb, c_emb,
            *fused["msg_v2c"], *fused["msg_c2v"],
            *fused["c_update"], *fused["v_update"])
    v_out, c_out = pl.pallas_call(
        _gin_vcg_kernel,
        out_shape=(jax.ShapeDtypeStruct((v_emb.shape[0], n_iterations * dim), jnp.float32),
                   jax.ShapeDtypeStruct((c_emb.shape[0], n_iterations * dim), jnp.float32)),
        in_specs=[_VMEM] * len(args),
        out_specs=(_VMEM, _VMEM),
    )(*args)
    v_embs = [v_emb] + [v_out[:, i * dim:(i + 1) * dim] for i in range(n_iterations)]
    c_embs = [c_emb] + [c_out[:, i * dim:(i + 1) * dim] for i in range(n_iterations)]
    return v_embs, c_embs


# --------------------------- pure-JAX reference ---------------------------------
def _mlp_ref(x, p):
    h = jnp.maximum(x @ p["w1"] + p["b1"], 0.0)
    return h @ p["w2"] + p["b2"]


def gin_vcg_forward_ref(params, v_size, c_size,
                        v_edge_index, c_edge_index, p_edge_index, n_edge_index,
                        v_emb, c_emb, n_iterations):
    """Mirror of the PyTorch forward (gather + scatter_sum)."""
    v_embs, c_embs = [v_emb], [c_emb]
    for _ in range(n_iterations):
        p_v2c_msg = _mlp_ref(v_emb, params["p_v2c"])[v_edge_index[p_edge_index]]
        n_v2c_msg = _mlp_ref(v_emb, params["n_v2c"])[v_edge_index[n_edge_index]]
        p_c2v_msg = _mlp_ref(c_emb, params["p_c2v"])[c_edge_index[p_edge_index]]
        n_c2v_msg = _mlp_ref(c_emb, params["n_c2v"])[c_edge_index[n_edge_index]]

        p_v2c_aggr = jax.ops.segment_sum(p_v2c_msg, c_edge_index[p_edge_index], num_segments=c_size)
        n_v2c_aggr = jax.ops.segment_sum(n_v2c_msg, c_edge_index[n_edge_index], num_segments=c_size)
        c_emb = _mlp_ref(jnp.concatenate([c_emb, p_v2c_aggr, n_v2c_aggr], axis=1), params["c_update"])
        c_embs.append(c_emb)

        p_c2v_aggr = jax.ops.segment_sum(p_c2v_msg, v_edge_index[p_edge_index], num_segments=v_size)
        n_c2v_aggr = jax.ops.segment_sum(n_c2v_msg, v_edge_index[n_edge_index], num_segments=v_size)
        v_emb = _mlp_ref(jnp.concatenate([v_emb, p_c2v_aggr, n_c2v_aggr], axis=1), params["v_update"])
        v_embs.append(v_emb)
    return v_embs, c_embs


# ------------------------------------ main -------------------------------------
if __name__ == "__main__":
    key = jax.random.PRNGKey(0)
    k_param, k_vemb, k_cemb = jax.random.split(key, 3)

    params = init_params(k_param, DIM)
    fused = fuse_params(params, DIM)

    # deterministic synthetic VCG graph (host-side)
    rng = np.random.default_rng(0)
    v_edge_np = rng.integers(0, V_SIZE, size=(N_EDGES,)).astype(np.int32)
    c_edge_np = rng.integers(0, C_SIZE, size=(N_EDGES,)).astype(np.int32)
    polarity = rng.integers(0, 2, size=(N_EDGES,))
    p_edge_np = np.nonzero(polarity == 1)[0].astype(np.int32)
    n_edge_np = np.nonzero(polarity == 0)[0].astype(np.int32)

    # adjacencies precomputed ONCE on the host (edge indices are static per problem)
    A_p_np = build_adjacency_np(v_edge_np, c_edge_np, p_edge_np, V_SIZE, C_SIZE)
    A_n_np = build_adjacency_np(v_edge_np, c_edge_np, n_edge_np, V_SIZE, C_SIZE)
    A_p, A_n = jnp.asarray(A_p_np), jnp.asarray(A_n_np)
    A_pT, A_nT = jnp.asarray(A_p_np.T.copy()), jnp.asarray(A_n_np.T.copy())

    v_emb = jax.random.normal(k_vemb, (V_SIZE, DIM), jnp.float32)
    c_emb = jax.random.normal(k_cemb, (C_SIZE, DIM), jnp.float32)

    v_embs, c_embs = gin_vcg_forward_pallas(
        fused, A_p, A_n, A_pT, A_nT, v_emb, c_emb, N_ITERATIONS)
    jax.block_until_ready(v_embs[-1])
    jax.block_until_ready(c_embs[-1])

    # correctness check against the pure-JAX gather/scatter reference (f32 -> tight tol)
    v_ref, c_ref = gin_vcg_forward_ref(
        params, V_SIZE, C_SIZE,
        jnp.asarray(v_edge_np), jnp.asarray(c_edge_np),
        jnp.asarray(p_edge_np), jnp.asarray(n_edge_np),
        v_emb, c_emb, N_ITERATIONS)
    for a, b in zip(v_embs, v_ref):
        np.testing.assert_allclose(np.asarray(a), np.asarray(b), rtol=1e-4, atol=1e-4)
    for a, b in zip(c_embs, c_ref):
        np.testing.assert_allclose(np.asarray(a), np.asarray(b), rtol=1e-4, atol=1e-4)

    print("KERNEL_OK")
</pallas_src>

<mosaic_0001>
module attributes {stable_mosaic.version = 11 : i64} {
  func.func @_gin_vcg_kernel(%arg0: memref<6x8xf32, #tpu.memory_space<vmem>>, %arg1: memref<6x8xf32, #tpu.memory_space<vmem>>, %arg2: memref<8x6xf32, #tpu.memory_space<vmem>>, %arg3: memref<8x6xf32, #tpu.memory_space<vmem>>, %arg4: memref<8x32xf32, #tpu.memory_space<vmem>>, %arg5: memref<6x32xf32, #tpu.memory_space<vmem>>, %arg6: memref<32x64xf32, #tpu.memory_space<vmem>>, %arg7: memref<1x64xf32, #tpu.memory_space<vmem>>, %arg8: memref<64x64xf32, #tpu.memory_space<vmem>>, %arg9: memref<1x64xf32, #tpu.memory_space<vmem>>, %arg10: memref<32x64xf32, #tpu.memory_space<vmem>>, %arg11: memref<1x64xf32, #tpu.memory_space<vmem>>, %arg12: memref<64x64xf32, #tpu.memory_space<vmem>>, %arg13: memref<1x64xf32, #tpu.memory_space<vmem>>, %arg14: memref<32x32xf32, #tpu.memory_space<vmem>>, %arg15: memref<64x32xf32, #tpu.memory_space<vmem>>, %arg16: memref<1x32xf32, #tpu.memory_space<vmem>>, %arg17: memref<32x32xf32, #tpu.memory_space<vmem>>, %arg18: memref<1x32xf32, #tpu.memory_space<vmem>>, %arg19: memref<32x32xf32, #tpu.memory_space<vmem>>, %arg20: memref<64x32xf32, #tpu.memory_space<vmem>>, %arg21: memref<1x32xf32, #tpu.memory_space<vmem>>, %arg22: memref<32x32xf32, #tpu.memory_space<vmem>>, %arg23: memref<1x32xf32, #tpu.memory_space<vmem>>, %arg24: memref<8x64xf32, #tpu.memory_space<vmem>>, %arg25: memref<6x64xf32, #tpu.memory_space<vmem>>) attributes {dimension_semantics = [], scalar_prefetch = 0 : i64, scratch_operands = 0 : i64, tpu.core_type = #tpu.core_type<tc>} {
    %c0 = arith.constant 0 : index
    %c0_0 = arith.constant 0 : index
    %0 = vector.load %arg0[%c0, %c0_0] : memref<6x8xf32, #tpu.memory_space<vmem>>, vector<6x8xf32>
    %c0_1 = arith.constant 0 : index
    %c0_2 = arith.constant 0 : index
    %1 = vector.load %arg1[%c0_1, %c0_2] : memref<6x8xf32, #tpu.memory_space<vmem>>, vector<6x8xf32>
    %c0_3 = arith.constant 0 : index
    %c0_4 = arith.constant 0 : index
    %2 = vector.load %arg2[%c0_3, %c0_4] : memref<8x6xf32, #tpu.memory_space<vmem>>, vector<8x6xf32>
    %c0_5 = arith.constant 0 : index
    %c0_6 = arith.constant 0 : index
    %3 = vector.load %arg3[%c0_5, %c0_6] : memref<8x6xf32, #tpu.memory_space<vmem>>, vector<8x6xf32>
    %c0_7 = arith.constant 0 : index
    %c0_8 = arith.constant 0 : index
    %4 = vector.load %arg6[%c0_7, %c0_8] : memref<32x64xf32, #tpu.memory_space<vmem>>, vector<32x64xf32>
    %c0_9 = arith.constant 0 : index
    %c0_10 = arith.constant 0 : index
    %5 = vector.load %arg8[%c0_9, %c0_10] : memref<64x64xf32, #tpu.memory_space<vmem>>, vector<64x64xf32>
    %c0_11 = arith.constant 0 : index
    %c0_12 = arith.constant 0 : index
    %6 = vector.load %arg10[%c0_11, %c0_12] : memref<32x64xf32, #tpu.memory_space<vmem>>, vector<32x64xf32>
    %c0_13 = arith.constant 0 : index
    %c0_14 = arith.constant 0 : index
    %7 = vector.load %arg12[%c0_13, %c0_14] : memref<64x64xf32, #tpu.memory_space<vmem>>, vector<64x64xf32>
    %c0_15 = arith.constant 0 : index
    %c0_16 = arith.constant 0 : index
    %8 = vector.load %arg14[%c0_15, %c0_16] : memref<32x32xf32, #tpu.memory_space<vmem>>, vector<32x32xf32>
    %c0_17 = arith.constant 0 : index
    %c0_18 = arith.constant 0 : index
    %9 = vector.load %arg15[%c0_17, %c0_18] : memref<64x32xf32, #tpu.memory_space<vmem>>, vector<64x32xf32>
    %c0_19 = arith.constant 0 : index
    %c0_20 = arith.constant 0 : index
    %10 = vector.load %arg17[%c0_19, %c0_20] : memref<32x32xf32, #tpu.memory_space<vmem>>, vector<32x32xf32>
    %c0_21 = arith.constant 0 : index
    %c0_22 = arith.constant 0 : index
    %11 = vector.load %arg19[%c0_21, %c0_22] : memref<32x32xf32, #tpu.memory_space<vmem>>, vector<32x32xf32>
    %c0_23 = arith.constant 0 : index
    %c0_24 = arith.constant 0 : index
    %12 = vector.load %arg20[%c0_23, %c0_24] : memref<64x32xf32, #tpu.memory_space<vmem>>, vector<64x32xf32>
    %c0_25 = arith.constant 0 : index
    %c0_26 = arith.constant 0 : index
    %13 = vector.load %arg22[%c0_25, %c0_26] : memref<32x32xf32, #tpu.memory_space<vmem>>, vector<32x32xf32>
    %c0_27 = arith.constant 0 : index
    %c0_28 = arith.constant 0 : index
    %14 = vector.load %arg7[%c0_27, %c0_28] : memref<1x64xf32, #tpu.memory_space<vmem>>, vector<1x64xf32>
    %15 = vector.shape_cast %14 : vector<1x64xf32> to vector<1x64xf32>
    %16 = vector.broadcast %15 : vector<1x64xf32> to vector<8x64xf32>
    %c0_29 = arith.constant 0 : index
    %c0_30 = arith.constant 0 : index
    %17 = vector.load %arg9[%c0_29, %c0_30] : memref<1x64xf32, #tpu.memory_space<vmem>>, vector<1x64xf32>
    %18 = vector.shape_cast %17 : vector<1x64xf32> to vector<1x64xf32>
    %19 = vector.broadcast %18 : vector<1x64xf32> to vector<8x64xf32>
    %c0_31 = arith.constant 0 : index
    %c0_32 = arith.constant 0 : index
    %20 = vector.load %arg11[%c0_31, %c0_32] : memref<1x64xf32, #tpu.memory_space<vmem>>, vector<1x64xf32>
    %21 = vector.shape_cast %20 : vector<1x64xf32> to vector<1x64xf32>
    %22 = vector.broadcast %21 : vector<1x64xf32> to vector<6x64xf32>
    %c0_33 = arith.constant 0 : index
    %c0_34 = arith.constant 0 : index
    %23 = vector.load %arg13[%c0_33, %c0_34] : memref<1x64xf32, #tpu.memory_space<vmem>>, vector<1x64xf32>
    %24 = vector.shape_cast %23 : vector<1x64xf32> to vector<1x64xf32>
    %25 = vector.broadcast %24 : vector<1x64xf32> to vector<6x64xf32>
    %c0_35 = arith.constant 0 : index
    %c0_36 = arith.constant 0 : index
    %26 = vector.load %arg16[%c0_35, %c0_36] : memref<1x32xf32, #tpu.memory_space<vmem>>, vector<1x32xf32>
    %27 = vector.shape_cast %26 : vector<1x32xf32> to vector<1x32xf32>
    %28 = vector.broadcast %27 : vector<1x32xf32> to vector<6x32xf32>
    %c0_37 = arith.constant 0 : index
    %c0_38 = arith.constant 0 : index
    %29 = vector.load %arg18[%c0_37, %c0_38] : memref<1x32xf32, #tpu.memory_space<vmem>>, vector<1x32xf32>
    %30 = vector.shape_cast %29 : vector<1x32xf32> to vector<1x32xf32>
    %31 = vector.broadcast %30 : vector<1x32xf32> to vector<6x32xf32>
    %c0_39 = arith.constant 0 : index
    %c0_40 = arith.constant 0 : index
    %32 = vector.load %arg21[%c0_39, %c0_40] : memref<1x32xf32, #tpu.memory_space<vmem>>, vector<1x32xf32>
    %33 = vector.shape_cast %32 : vector<1x32xf32> to vector<1x32xf32>
    %34 = vector.broadcast %33 : vector<1x32xf32> to vector<8x32xf32>
    %c0_41 = arith.constant 0 : index
    %c0_42 = arith.constant 0 : index
    %35 = vector.load %arg23[%c0_41, %c0_42] : memref<1x32xf32, #tpu.memory_space<vmem>>, vector<1x32xf32>
    %36 = vector.shape_cast %35 : vector<1x32xf32> to vector<1x32xf32>
    %37 = vector.broadcast %36 : vector<1x32xf32> to vector<8x32xf32>
    %c0_43 = arith.constant 0 : index
    %c0_44 = arith.constant 0 : index
    %38 = vector.load %arg4[%c0_43, %c0_44] : memref<8x32xf32, #tpu.memory_space<vmem>>, vector<8x32xf32>
    %c0_45 = arith.constant 0 : index
    %c0_46 = arith.constant 0 : index
    %39 = vector.load %arg5[%c0_45, %c0_46] : memref<6x32xf32, #tpu.memory_space<vmem>>, vector<6x32xf32>
    %cst = arith.constant dense<0.000000e+00> : vector<8x64xf32>
    %40 = tpu.matmul %38, %4, %cst {dimension_numbers = #tpu.dot_dimension_numbers<[1], [0], [0], [1], [0, 0, 1, 1], [], []>} : vector<8x32xf32>, vector<32x64xf32>, vector<8x64xf32> -> vector<8x64xf32>
    %41 = arith.addf %40, %16 : vector<8x64xf32>
    %cst_47 = arith.constant 0.000000e+00 : f32
    %42 = vector.broadcast %cst_47 : f32 to vector<8x64xf32>
    %43 = arith.maximumf %41, %42 : vector<8x64xf32>
    %cst_48 = arith.constant dense<0.000000e+00> : vector<8x64xf32>
    %44 = tpu.matmul %43, %5, %cst_48 {dimension_numbers = #tpu.dot_dimension_numbers<[1], [0], [0], [1], [0, 0, 1, 1], [], []>} : vector<8x64xf32>, vector<64x64xf32>, vector<8x64xf32> -> vector<8x64xf32>
    %45 = arith.addf %44, %19 : vector<8x64xf32>
    %cst_49 = arith.constant dense<0.000000e+00> : vector<6x64xf32>
    %46 = tpu.matmul %39, %6, %cst_49 {dimension_numbers = #tpu.dot_dimension_numbers<[1], [0], [0], [1], [0, 0, 1, 1], [], []>} : vector<6x32xf32>, vector<32x64xf32>, vector<6x64xf32> -> vector<6x64xf32>
    %47 = arith.addf %46, %22 : vector<6x64xf32>
    %cst_50 = arith.constant 0.000000e+00 : f32
    %48 = vector.broadcast %cst_50 : f32 to vector<6x64xf32>
    %49 = arith.maximumf %47, %48 : vector<6x64xf32>
    %cst_51 = arith.constant dense<0.000000e+00> : vector<6x64xf32>
    %50 = tpu.matmul %49, %7, %cst_51 {dimension_numbers = #tpu.dot_dimension_numbers<[1], [0], [0], [1], [0, 0, 1, 1], [], []>} : vector<6x64xf32>, vector<64x64xf32>, vector<6x64xf32> -> vector<6x64xf32>
    %51 = arith.addf %50, %25 : vector<6x64xf32>
    %52 = vector.extract_strided_slice %45 {offsets = [0, 0], sizes = [8, 32], strides = [1, 1]} : vector<8x64xf32> to vector<8x32xf32>
    %cst_52 = arith.constant dense<0.000000e+00> : vector<6x32xf32>
    %53 = tpu.matmul %0, %52, %cst_52 {dimension_numbers = #tpu.dot_dimension_numbers<[1], [0], [0], [1], [0, 0, 1, 1], [], []>} : vector<6x8xf32>, vector<8x32xf32>, vector<6x32xf32> -> vector<6x32xf32>
    %54 = vector.extract_strided_slice %45 {offsets = [0, 32], sizes = [8, 32], strides = [1, 1]} : vector<8x64xf32> to vector<8x32xf32>
    %cst_53 = arith.constant dense<0.000000e+00> : vector<6x32xf32>
    %55 = tpu.matmul %1, %54, %cst_53 {dimension_numbers = #tpu.dot_dimension_numbers<[1], [0], [0], [1], [0, 0, 1, 1], [], []>} : vector<6x8xf32>, vector<8x32xf32>, vector<6x32xf32> -> vector<6x32xf32>
    %56 = tpu.concatenate %53, %55 in 1 : vector<6x32xf32>, vector<6x32xf32> -> vector<6x64xf32>
    %57 = vector.extract_strided_slice %51 {offsets = [0, 0], sizes = [6, 32], strides = [1, 1]} : vector<6x64xf32> to vector<6x32xf32>
    %cst_54 = arith.constant dense<0.000000e+00> : vector<8x32xf32>
    %58 = tpu.matmul %2, %57, %cst_54 {dimension_numbers = #tpu.dot_dimension_numbers<[1], [0], [0], [1], [0, 0, 1, 1], [], []>} : vector<8x6xf32>, vector<6x32xf32>, vector<8x32xf32> -> vector<8x32xf32>
    %59 = vector.extract_strided_slice %51 {offsets = [0, 32], sizes = [6, 32], strides = [1, 1]} : vector<6x64xf32> to vector<6x32xf32>
    %cst_55 = arith.constant dense<0.000000e+00> : vector<8x32xf32>
    %60 = tpu.matmul %3, %59, %cst_55 {dimension_numbers = #tpu.dot_dimension_numbers<[1], [0], [0], [1], [0, 0, 1, 1], [], []>} : vector<8x6xf32>, vector<6x32xf32>, vector<8x32xf32> -> vector<8x32xf32>
    %61 = tpu.concatenate %58, %60 in 1 : vector<8x32xf32>, vector<8x32xf32> -> vector<8x64xf32>
    %cst_56 = arith.constant dense<0.000000e+00> : vector<6x32xf32>
    %62 = tpu.matmul %39, %8, %cst_56 {dimension_numbers = #tpu.dot_dimension_numbers<[1], [0], [0], [1], [0, 0, 1, 1], [], []>} : vector<6x32xf32>, vector<32x32xf32>, vector<6x32xf32> -> vector<6x32xf32>
    %cst_57 = arith.constant dense<0.000000e+00> : vector<6x32xf32>
    %63 = tpu.matmul %56, %9, %cst_57 {dimension_numbers = #tpu.dot_dimension_numbers<[1], [0], [0], [1], [0, 0, 1, 1], [], []>} : vector<6x64xf32>, vector<64x32xf32>, vector<6x32xf32> -> vector<6x32xf32>
    %64 = arith.addf %62, %63 : vector<6x32xf32>
    %65 = arith.addf %64, %28 : vector<6x32xf32>
    %cst_58 = arith.constant 0.000000e+00 : f32
    %66 = vector.broadcast %cst_58 : f32 to vector<6x32xf32>
    %67 = arith.maximumf %65, %66 : vector<6x32xf32>
    %cst_59 = arith.constant dense<0.000000e+00> : vector<6x32xf32>
    %68 = tpu.matmul %67, %10, %cst_59 {dimension_numbers = #tpu.dot_dimension_numbers<[1], [0], [0], [1], [0, 0, 1, 1], [], []>} : vector<6x32xf32>, vector<32x32xf32>, vector<6x32xf32> -> vector<6x32xf32>
    %69 = arith.addf %68, %31 : vector<6x32xf32>
    %cst_60 = arith.constant dense<0.000000e+00> : vector<8x32xf32>
    %70 = tpu.matmul %38, %11, %cst_60 {dimension_numbers = #tpu.dot_dimension_numbers<[1], [0], [0], [1], [0, 0, 1, 1], [], []>} : vector<8x32xf32>, vector<32x32xf32>, vector<8x32xf32> -> vector<8x32xf32>
    %cst_61 = arith.constant dense<0.000000e+00> : vector<8x32xf32>
    %71 = tpu.matmul %61, %12, %cst_61 {dimension_numbers = #tpu.dot_dimension_numbers<[1], [0], [0], [1], [0, 0, 1, 1], [], []>} : vector<8x64xf32>, vector<64x32xf32>, vector<8x32xf32> -> vector<8x32xf32>
    %72 = arith.addf %70, %71 : vector<8x32xf32>
    %73 = arith.addf %72, %34 : vector<8x32xf32>
    %cst_62 = arith.constant 0.000000e+00 : f32
    %74 = vector.broadcast %cst_62 : f32 to vector<8x32xf32>
    %75 = arith.maximumf %73, %74 : vector<8x32xf32>
    %cst_63 = arith.constant dense<0.000000e+00> : vector<8x32xf32>
    %76 = tpu.matmul %75, %13, %cst_63 {dimension_numbers = #tpu.dot_dimension_numbers<[1], [0], [0], [1], [0, 0, 1, 1], [], []>} : vector<8x32xf32>, vector<32x32xf32>, vector<8x32xf32> -> vector<8x32xf32>
    %77 = arith.addf %76, %37 : vector<8x32xf32>
    %cst_64 = arith.constant dense<0.000000e+00> : vector<8x64xf32>
    %78 = tpu.matmul %77, %4, %cst_64 {dimension_numbers = #tpu.dot_dimension_numbers<[1], [0], [0], [1], [0, 0, 1, 1], [], []>} : vector<8x32xf32>, vector<32x64xf32>, vector<8x64xf32> -> vector<8x64xf32>
    %79 = arith.addf %78, %16 : vector<8x64xf32>
    %cst_65 = arith.constant 0.000000e+00 : f32
    %80 = vector.broadcast %cst_65 : f32 to vector<8x64xf32>
    %81 = arith.maximumf %79, %80 : vector<8x64xf32>
    %cst_66 = arith.constant dense<0.000000e+00> : vector<8x64xf32>
    %82 = tpu.matmul %81, %5, %cst_66 {dimension_numbers = #tpu.dot_dimension_numbers<[1], [0], [0], [1], [0, 0, 1, 1], [], []>} : vector<8x64xf32>, vector<64x64xf32>, vector<8x64xf32> -> vector<8x64xf32>
    %83 = arith.addf %82, %19 : vector<8x64xf32>
    %cst_67 = arith.constant dense<0.000000e+00> : vector<6x64xf32>
    %84 = tpu.matmul %69, %6, %cst_67 {dimension_numbers = #tpu.dot_dimension_numbers<[1], [0], [0], [1], [0, 0, 1, 1], [], []>} : vector<6x32xf32>, vector<32x64xf32>, vector<6x64xf32> -> vector<6x64xf32>
    %85 = arith.addf %84, %22 : vector<6x64xf32>
    %cst_68 = arith.constant 0.000000e+00 : f32
    %86 = vector.broadcast %cst_68 : f32 to vector<6x64xf32>
    %87 = arith.maximumf %85, %86 : vector<6x64xf32>
    %cst_69 = arith.constant dense<0.000000e+00> : vector<6x64xf32>
    %88 = tpu.matmul %87, %7, %cst_69 {dimension_numbers = #tpu.dot_dimension_numbers<[1], [0], [0], [1], [0, 0, 1, 1], [], []>} : vector<6x64xf32>, vector<64x64xf32>, vector<6x64xf32> -> vector<6x64xf32>
    %89 = arith.addf %88, %25 : vector<6x64xf32>
    %90 = vector.extract_strided_slice %83 {offsets = [0, 0], sizes = [8, 32], strides = [1, 1]} : vector<8x64xf32> to vector<8x32xf32>
    %cst_70 = arith.constant dense<0.000000e+00> : vector<6x32xf32>
    %91 = tpu.matmul %0, %90, %cst_70 {dimension_numbers = #tpu.dot_dimension_numbers<[1], [0], [0], [1], [0, 0, 1, 1], [], []>} : vector<6x8xf32>, vector<8x32xf32>, vector<6x32xf32> -> vector<6x32xf32>
    %92 = vector.extract_strided_slice %83 {offsets = [0, 32], sizes = [8, 32], strides = [1, 1]} : vector<8x64xf32> to vector<8x32xf32>
    %cst_71 = arith.constant dense<0.000000e+00> : vector<6x32xf32>
    %93 = tpu.matmul %1, %92, %cst_71 {dimension_numbers = #tpu.dot_dimension_numbers<[1], [0], [0], [1], [0, 0, 1, 1], [], []>} : vector<6x8xf32>, vector<8x32xf32>, vector<6x32xf32> -> vector<6x32xf32>
    %94 = tpu.concatenate %91, %93 in 1 : vector<6x32xf32>, vector<6x32xf32> -> vector<6x64xf32>
    %95 = vector.extract_strided_slice %89 {offsets = [0, 0], sizes = [6, 32], strides = [1, 1]} : vector<6x64xf32> to vector<6x32xf32>
    %cst_72 = arith.constant dense<0.000000e+00> : vector<8x32xf32>
    %96 = tpu.matmul %2, %95, %cst_72 {dimension_numbers = #tpu.dot_dimension_numbers<[1], [0], [0], [1], [0, 0, 1, 1], [], []>} : vector<8x6xf32>, vector<6x32xf32>, vector<8x32xf32> -> vector<8x32xf32>
    %97 = vector.extract_strided_slice %89 {offsets = [0, 32], sizes = [6, 32], strides = [1, 1]} : vector<6x64xf32> to vector<6x32xf32>
    %cst_73 = arith.constant dense<0.000000e+00> : vector<8x32xf32>
    %98 = tpu.matmul %3, %97, %cst_73 {dimension_numbers = #tpu.dot_dimension_numbers<[1], [0], [0], [1], [0, 0, 1, 1], [], []>} : vector<8x6xf32>, vector<6x32xf32>, vector<8x32xf32> -> vector<8x32xf32>
    %99 = tpu.concatenate %96, %98 in 1 : vector<8x32xf32>, vector<8x32xf32> -> vector<8x64xf32>
    %cst_74 = arith.constant dense<0.000000e+00> : vector<6x32xf32>
    %100 = tpu.matmul %69, %8, %cst_74 {dimension_numbers = #tpu.dot_dimension_numbers<[1], [0], [0], [1], [0, 0, 1, 1], [], []>} : vector<6x32xf32>, vector<32x32xf32>, vector<6x32xf32> -> vector<6x32xf32>
    %cst_75 = arith.constant dense<0.000000e+00> : vector<6x32xf32>
    %101 = tpu.matmul %94, %9, %cst_75 {dimension_numbers = #tpu.dot_dimension_numbers<[1], [0], [0], [1], [0, 0, 1, 1], [], []>} : vector<6x64xf32>, vector<64x32xf32>, vector<6x32xf32> -> vector<6x32xf32>
    %102 = arith.addf %100, %101 : vector<6x32xf32>
    %103 = arith.addf %102, %28 : vector<6x32xf32>
    %cst_76 = arith.constant 0.000000e+00 : f32
    %104 = vector.broadcast %cst_76 : f32 to vector<6x32xf32>
    %105 = arith.maximumf %103, %104 : vector<6x32xf32>
    %cst_77 = arith.constant dense<0.000000e+00> : vector<6x32xf32>
    %106 = tpu.matmul %105, %10, %cst_77 {dimension_numbers = #tpu.dot_dimension_numbers<[1], [0], [0], [1], [0, 0, 1, 1], [], []>} : vector<6x32xf32>, vector<32x32xf32>, vector<6x32xf32> -> vector<6x32xf32>
    %107 = arith.addf %106, %31 : vector<6x32xf32>
    %cst_78 = arith.constant dense<0.000000e+00> : vector<8x32xf32>
    %108 = tpu.matmul %77, %11, %cst_78 {dimension_numbers = #tpu.dot_dimension_numbers<[1], [0], [0], [1], [0, 0, 1, 1], [], []>} : vector<8x32xf32>, vector<32x32xf32>, vector<8x32xf32> -> vector<8x32xf32>
    %cst_79 = arith.constant dense<0.000000e+00> : vector<8x32xf32>
    %109 = tpu.matmul %99, %12, %cst_79 {dimension_numbers = #tpu.dot_dimension_numbers<[1], [0], [0], [1], [0, 0, 1, 1], [], []>} : vector<8x64xf32>, vector<64x32xf32>, vector<8x32xf32> -> vector<8x32xf32>
    %110 = arith.addf %108, %109 : vector<8x32xf32>
    %111 = arith.addf %110, %34 : vector<8x32xf32>
    %cst_80 = arith.constant 0.000000e+00 : f32
    %112 = vector.broadcast %cst_80 : f32 to vector<8x32xf32>
    %113 = arith.maximumf %111, %112 : vector<8x32xf32>
    %cst_81 = arith.constant dense<0.000000e+00> : vector<8x32xf32>
    %114 = tpu.matmul %113, %13, %cst_81 {dimension_numbers = #tpu.dot_dimension_numbers<[1], [0], [0], [1], [0, 0, 1, 1], [], []>} : vector<8x32xf32>, vector<32x32xf32>, vector<8x32xf32> -> vector<8x32xf32>
    %115 = arith.addf %114, %37 : vector<8x32xf32>
    %116 = tpu.concatenate %77, %115 in 1 : vector<8x32xf32>, vector<8x32xf32> -> vector<8x64xf32>
    %c0_82 = arith.constant 0 : index
    %c0_83 = arith.constant 0 : index
    %117 = vector.load %arg24[%c0_82, %c0_83] : memref<8x64xf32, #tpu.memory_space<vmem>>, vector<8x64xf32>
    tpu.vector_store %arg24[%c0_82, %c0_83], %116 {strides = array<i32>} : memref<8x64xf32, #tpu.memory_space<vmem>>, vector<8x64xf32>,
    %118 = tpu.concatenate %69, %107 in 1 : vector<6x32xf32>, vector<6x32xf32> -> vector<6x64xf32>
    %c0_84 = arith.constant 0 : index
    %c0_85 = arith.constant 0 : index
    %119 = vector.load %arg25[%c0_84, %c0_85] : memref<6x64xf32, #tpu.memory_space<vmem>>, vector<6x64xf32>
    tpu.vector_store %arg25[%c0_84, %c0_85], %118 {strides = array<i32>} : memref<6x64xf32, #tpu.memory_space<vmem>>, vector<6x64xf32>,
    return
  }
}

</mosaic_0001>

<bundles_post_ra>
// kernel: tpu_custom_call.1
= control target key start
LH: loop header
LB: loop body
LE: loop exit
PB: predicated region body
PF: predicated region fallthrough
CT: control target
= control target key end

     0   :  { %s4452_s0 = inlined_call_operand.hbm [shape: f32[6,8], index: 0, kind: input, shape index: {}]   ;;  %s4453_s1 = inlined_call_operand.hbm [shape: f32[6,8], index: 1, kind: input, shape index: {}]   ;;  %s4454_s2 = inlined_call_operand.hbm [shape: f32[8,6], index: 2, kind: input, shape index: {}]   ;;  %s4455_s3 = inlined_call_operand.hbm [shape: f32[8,6], index: 3, kind: input, shape index: {}]   ;;  %s4456_s4 = inlined_call_operand.hbm [shape: f32[8,32], index: 4, kind: input, shape index: {}]   ;;  %s4457_s5 = inlined_call_operand.hbm [shape: f32[6,32], index: 5, kind: input, shape index: {}]   ;;  %s4458_s6 = inlined_call_operand.vmem [shape: f32[32,64], index: 6, kind: input, shape index: {}]   ;;  %s4459_s7 = inlined_call_operand.hbm [shape: f32[1,64], index: 7, kind: input, shape index: {}]   ;;  %s4460_s8 = inlined_call_operand.vmem [shape: f32[64,64], index: 8, kind: input, shape index: {}]   ;;  %s4461_s9 = inlined_call_operand.hbm [shape: f32[1,64], index: 9, kind: input, shape index: {}]   ;;  %s4462_s10 = inlined_call_operand.hbm [shape: f32[32,64], index: 10, kind: input, shape index: {}]   ;;  %s4463_s11 = inlined_call_operand.hbm [shape: f32[1,64], index: 11, kind: input, shape index: {}]   ;;  %s4464_s12 = inlined_call_operand.vmem [shape: f32[64,64], index: 12, kind: input, shape index: {}]   ;;  %s4465_s13 = inlined_call_operand.hbm [shape: f32[1,64], index: 13, kind: input, shape index: {}]   ;;  %s4466_s14 = inlined_call_operand.hbm [shape: f32[32,32], index: 14, kind: input, shape index: {}]   ;;  %s4467_s15 = inlined_call_operand.vmem [shape: f32[64,32], index: 15, kind: input, shape index: {}]   ;;  %s4468_s16 = inlined_call_operand.hbm [shape: f32[1,32], index: 16, kind: input, shape index: {}]   ;;  %s4469_s17 = inlined_call_operand.vmem [shape: f32[32,32], index: 17, kind: input, shape index: {}]   ;;  %s4470_s18 = inlined_call_operand.vmem [shape: f32[1,32], index: 18, kind: input, shape index: {}]   ;;  %s4471_s19 = inlined_call_operand.hbm [shape: f32[32,32], index: 19, kind: input, shape index: {}]   ;;  %s4472_s20 = inlined_call_operand.vmem [shape: f32[64,32], index: 20, kind: input, shape index: {}]   ;;  %s4473_s21 = inlined_call_operand.vmem [shape: f32[1,32], index: 21, kind: input, shape index: {}]   ;;  %s4474_s22 = inlined_call_operand.hbm [shape: f32[32,32], index: 22, kind: input, shape index: {}]   ;;  %s4475_s23 = inlined_call_operand.vmem [shape: f32[1,32], index: 23, kind: input, shape index: {}]   ;;  %s4476_s24 = inlined_call_operand.hbm [shape: f32[8,64], index: 24, kind: output, shape index: {0}]   ;;  %s4477_s25 = inlined_call_operand.hbm [shape: f32[6,64], index: 25, kind: output, shape index: {1}]  }
   0x1   :  { %4489 = sst [smem:[#allocation39_spill]] %s4452_s0 }
   0x2   :  { %4490 = sst [smem:[#allocation40_spill]] %s4453_s1 }
   0x3   :  { %4491 = sst [smem:[#allocation41_spill]] %s4454_s2 }
   0x4   :  { %4492 = sst [smem:[#allocation42_spill]] %s4455_s3 }
   0x5   :  { %4493 = sst [smem:[#allocation43_spill]] %s4456_s4 }
   0x6   :  { %4494 = sst [smem:[#allocation44_spill]] %s4457_s5 }
   0x7   :  { %4495 = sst [smem:[#allocation45_spill]] %s4458_s6 }
   0x8   :  { %4496 = sst [smem:[#allocation46_spill]] %s4459_s7 }
   0x9   :  { %4497 = sst [smem:[#allocation47_spill]] %s4460_s8 }
   0xa   :  { %4498 = sst [smem:[#allocation48_spill]] %s4461_s9 }
   0xb   :  { %4499 = sst [smem:[#allocation49_spill]] %s4476_s24 }
   0xc   :  { %31 = vsyncpa [#allocation3], 0 }
   0xd   :  { %32 = vsyncpa [#allocation6], 0 }
   0xe   :  { %33 = vsyncpa [#allocation9], 0 }
   0xf   :  { %34 = vsyncpa [#allocation12], 0 }
  0x10   :  { %35 = vsyncpa [#allocation15], 0 }
  0x11   :  { %36 = vsyncpa [#allocation18], 0 }
  0x12   :  { %37 = vsyncpa [#allocation21], 0 }
  0x13   :  { %38 = vsyncpa [#allocation24], 0 }
  0x14   :  { %39 = vsyncpa [#allocation4], 0 }
  0x15   :  { %40 = vsyncpa [#allocation28], 0  ;;  %s3606_s29 = smov [#allocation5]   ;;  %s3607_s6 = smov [#allocation8]  }
  0x16   :  { %s57_s2 = sshll.u32 %s3606_s29, 4  ;;  %s77_s30 = sshll.u32 %s3607_s6, 4  ;;  %s58_s2 = int_to_ptr.vmem [resolvable:$true] %s57_s2  ;;  %s78_s30 = int_to_ptr.vmem [resolvable:$true] %s77_s30 }
  0x17   :  { %s4500_s26 = sld [smem:[#allocation40_spill]] }
  0x1d   :  { %s3212_s1 = scalar_lea.hbm %s4500_s26, 128 }
  0x1e   :  { %p3213_p0 = scmp.ne.s32.totalorder %s4500_s26, %s3212_s1  ;;  %p3216_p1 = scmp.lt.u32.totalorder %s3212_s1, %s4500_s26 }
  0x20   :  { %p3218_p2 = pnand %p3216_p1, %p3213_p0 }
  0x22   :  { %3221 = shalt.err (!%p3218_p2)
}
  0x23   :  { %s3222_s9 = scalar_lea.vmem %s58_s2, 128  ;;  %p3227_p4 = scmp.lt.s32.totalorder %s58_s2, %s58_s2 }
  0x24   :  { %p3223_p3 = scmp.ne.s32.totalorder %s58_s2, %s3222_s9  ;;  %p3228_p5 = scmp.lt.s32.totalorder %s3222_s9, %s3222_s9 }
  0x26   :  { %p3229_p6 = por %p3228_p5, %p3227_p4 }
  0x28   :  { %p3230_p7 = pnand %p3229_p6, %p3223_p3 }
  0x2a   :  { %3233 = shalt.err (!%p3230_p7)
}
  0x2b   :  { %60 = dma.hbm_to_vmem [thread:$0]  %s4500_s26, 128, %s58_s2, [#allocation6]  }
  0x2c   :  { %s4501_s7 = sld [smem:[#allocation42_spill]] }
  0x32   :  { %s3234_s3 = scalar_lea.hbm %s4501_s7, 128 }
  0x33   :  { %p3235_p8 = scmp.ne.s32.totalorder %s4501_s7, %s3234_s3  ;;  %p3238_p9 = scmp.lt.u32.totalorder %s3234_s3, %s4501_s7 }
  0x35   :  { %p3240_p10 = pnand %p3238_p9, %p3235_p8 }
  0x37   :  { %3243 = shalt.err (!%p3240_p10)
}
  0x38   :  { %s3244_s28 = scalar_lea.vmem %s78_s30, 128  ;;  %p3249_p12 = scmp.lt.s32.totalorder %s78_s30, %s78_s30 }
  0x39   :  { %p3245_p11 = scmp.ne.s32.totalorder %s78_s30, %s3244_s28  ;;  %p3250_p13 = scmp.lt.s32.totalorder %s3244_s28, %s3244_s28 }
  0x3b   :  { %p3251_p0 = por %p3250_p13, %p3249_p12 }
  0x3d   :  { %p3252_p1 = pnand %p3251_p0, %p3245_p11 }
  0x3f   :  { %3255 = shalt.err (!%p3252_p1)
}
  0x40   :  { %80 = dma.hbm_to_vmem [thread:$0]  %s4501_s7, 128, %s78_s30, [#allocation9]  }
  0x41   :  { %s3608_s9 = smov [#allocation11]   ;;  %s3609_s0 = smov [#allocation14]  }
  0x42   :  { %s97_s5 = sshll.u32 %s3608_s9, 4  ;;  %s121_s29 = sshll.u32 %s3609_s0, 4  ;;  %s98_s5 = int_to_ptr.vmem [resolvable:$true] %s97_s5  ;;  %s122_s29 = int_to_ptr.vmem [resolvable:$true] %s121_s29 }
  0x43   :  { %s4502_s8 = sld [smem:[#allocation44_spill]] }
  0x49   :  { %s3256_s27 = scalar_lea.hbm %s4502_s8, 128 }
  0x4a   :  { %p3257_p2 = scmp.ne.s32.totalorder %s4502_s8, %s3256_s27  ;;  %p3260_p3 = scmp.lt.u32.totalorder %s3256_s27, %s4502_s8 }
  0x4c   :  { %p3262_p4 = pnand %p3260_p3, %p3257_p2 }
  0x4e   :  { %3265 = shalt.err (!%p3262_p4)
}
  0x4f   :  { %s3266_s30 = scalar_lea.vmem %s98_s5, 128  ;;  %p3271_p6 = scmp.lt.s32.totalorder %s98_s5, %s98_s5 }
  0x50   :  { %p3267_p5 = scmp.ne.s32.totalorder %s98_s5, %s3266_s30  ;;  %p3272_p7 = scmp.lt.s32.totalorder %s3266_s30, %s3266_s30 }
  0x52   :  { %p3273_p8 = por %p3272_p7, %p3271_p6 }
  0x54   :  { %p3274_p9 = pnand %p3273_p8, %p3267_p5 }
  0x56   :  { %3277 = shalt.err (!%p3274_p9)
}
  0x57   :  { %100 = dma.hbm_to_vmem [thread:$0]  %s4502_s8, 128, %s98_s5, [#allocation12]  }
  0x58   :  { %s4503_s0 = sld [smem:[#allocation48_spill]] }
  0x5e   :  { %s3278_s6 = scalar_lea.hbm %s4503_s0, 16 }
  0x5f   :  { %p3279_p10 = scmp.ne.s32.totalorder %s4503_s0, %s3278_s6  ;;  %p3282_p11 = scmp.lt.u32.totalorder %s3278_s6, %s4503_s0 }
  0x61   :  { %p3284_p12 = pnand %p3282_p11, %p3279_p10 }
  0x63   :  { %3287 = shalt.err (!%p3284_p12)
}
  0x64   :  { %s3288_s4 = scalar_lea.vmem %s122_s29, 16  ;;  %s3292_s28 = scalar_lea.vmem %s122_s29, 32 }
  0x65   :  { %p3289_p13 = scmp.ne.s32.totalorder %s122_s29, %s3288_s4  ;;  %p3293_p0 = scmp.lt.s32.totalorder %s122_s29, %s122_s29 }
  0x66   :  { %p3294_p1 = scmp.lt.s32.totalorder %s3292_s28, %s3288_s4 }
  0x68   :  { %p3295_p2 = por %p3294_p1, %p3293_p0 }
  0x6a   :  { %p3296_p3 = pnand %p3295_p2, %p3289_p13 }
  0x6c   :  { %3299 = shalt.err (!%p3296_p3)
}
  0x6d   :  { %124 = dma.hbm_to_vmem [thread:$0]  %s4503_s0, 16, %s122_s29, [#allocation15]  }
  0x6e   :  { %s3610_s30 = smov [#allocation17]   ;;  %s3300_s9 = scalar_lea.hbm %s4463_s11, 16 }
  0x6f   :  { %s143_s7 = sshll.u32 %s3610_s30, 4  ;;  %p3301_p4 = scmp.ne.s32.totalorder %s4463_s11, %s3300_s9  ;;  %s144_s7 = int_to_ptr.vmem [resolvable:$true] %s143_s7 }
  0x70   :  { %p3304_p5 = scmp.lt.u32.totalorder %s3300_s9, %s4463_s11 }
  0x72   :  { %p3306_p6 = pnand %p3304_p5, %p3301_p4 }
  0x74   :  { %3309 = shalt.err (!%p3306_p6)
}
  0x75   :  { %s3310_s1 = scalar_lea.vmem %s144_s7, 16  ;;  %s3314_s29 = scalar_lea.vmem %s144_s7, 32 }
  0x76   :  { %p3311_p7 = scmp.ne.s32.totalorder %s144_s7, %s3310_s1  ;;  %p3315_p8 = scmp.lt.s32.totalorder %s144_s7, %s144_s7 }
  0x77   :  { %p3316_p9 = scmp.lt.s32.totalorder %s3314_s29, %s3310_s1 }
  0x79   :  { %p3317_p10 = por %p3316_p9, %p3315_p8 }
  0x7b   :  { %p3318_p11 = pnand %p3317_p10, %p3311_p7 }
  0x7d   :  { %3321 = shalt.err (!%p3318_p11)
}
  0x7e   :  { %146 = dma.hbm_to_vmem [thread:$0]  %s4463_s11, 16, %s144_s7, [#allocation18]  }
  0x7f   :  { %s3611_s28 = smov [#allocation20]   ;;  %s3612_s8 = smov [#allocation23]  }
  0x80   :  { %s164_s5 = sshll.u32 %s3611_s28, 4  ;;  %s192_s30 = sshll.u32 %s3612_s8, 4  ;;  %s165_s5 = int_to_ptr.vmem [resolvable:$true] %s164_s5  ;;  %s193_s30 = int_to_ptr.vmem [resolvable:$true] %s192_s30 }
  0x81   :  { %s3322_s9 = scalar_lea.hbm %s4466_s14, 512 }
  0x82   :  { %p3323_p12 = scmp.ne.s32.totalorder %s4466_s14, %s3322_s9  ;;  %p3326_p13 = scmp.lt.u32.totalorder %s3322_s9, %s4466_s14 }
  0x84   :  { %p3328_p0 = pnand %p3326_p13, %p3323_p12 }
  0x86   :  { %3331 = shalt.err (!%p3328_p0)
}
  0x87   :  { %s3332_s11 = scalar_lea.vmem %s165_s5, 512  ;;  %p3337_p2 = scmp.lt.s32.totalorder %s165_s5, %s165_s5 }
  0x88   :  { %p3333_p1 = scmp.ne.s32.totalorder %s165_s5, %s3332_s11  ;;  %p3338_p3 = scmp.lt.s32.totalorder %s3332_s11, %s3332_s11 }
  0x8a   :  { %p3339_p4 = por %p3338_p3, %p3337_p2 }
  0x8c   :  { %p3340_p5 = pnand %p3339_p4, %p3333_p1 }
  0x8e   :  { %3343 = shalt.err (!%p3340_p5)
}
  0x8f   :  { %s3613_s7 = smov 128   ;;  %s3614_s1 = smov 8  }
  0x90   :  { %170 = dma.hbm_to_vmem [thread:$0]  %s4466_s14, 512, %s165_s5, [#allocation21], %s3613_s7, %s3613_s7, %s3614_s1  }
  0x91   :  { %s3344_s8 = scalar_lea.hbm %s4471_s19, 512 }
  0x92   :  { %p3345_p6 = scmp.ne.s32.totalorder %s4471_s19, %s3344_s8  ;;  %p3348_p7 = scmp.lt.u32.totalorder %s3344_s8, %s4471_s19 }
  0x94   :  { %p3350_p8 = pnand %p3348_p7, %p3345_p6 }
  0x96   :  { %3353 = shalt.err (!%p3350_p8)
}
  0x97   :  { %s3354_s3 = scalar_lea.vmem %s193_s30, 512  ;;  %p3359_p10 = scmp.lt.s32.totalorder %s193_s30, %s193_s30 }
  0x98   :  { %p3355_p9 = scmp.ne.s32.totalorder %s193_s30, %s3354_s3  ;;  %p3360_p11 = scmp.lt.s32.totalorder %s3354_s3, %s3354_s3 }
  0x9a   :  { %p3361_p12 = por %p3360_p11, %p3359_p10 }
  0x9c   :  { %p3362_p13 = pnand %p3361_p12, %p3355_p9 }
  0x9e   :  { %3365 = shalt.err (!%p3362_p13)
}
  0x9f   :  { %198 = dma.hbm_to_vmem [thread:$0]  %s4471_s19, 512, %s193_s30, [#allocation24], %s3613_s7, %s3613_s7, %s3614_s1  }
  0xa0   :  { %s3615_s24 = smov [#allocation2]   ;;  %s3616_s11 = smov [#allocation7]  }
  0xa1   :  { %s47_s27 = sshll.u32 %s3615_s24, 4  ;;  %s67_s29 = sshll.u32 %s3616_s11, 4  ;;  %s48_s27 = int_to_ptr.vmem [resolvable:$true] %s47_s27  ;;  %s68_s29 = int_to_ptr.vmem [resolvable:$true] %s67_s29 }
  0xa2   :  { %s4504_s28 = sld [smem:[#allocation39_spill]] }
  0xa8   :  { %s3366_s8 = scalar_lea.hbm %s4504_s28, 128 }
  0xa9   :  { %p3367_p0 = scmp.ne.s32.totalorder %s4504_s28, %s3366_s8  ;;  %p3370_p1 = scmp.lt.u32.totalorder %s3366_s8, %s4504_s28 }
  0xab   :  { %p3372_p2 = pnand %p3370_p1, %p3367_p0 }
  0xad   :  { %3375 = shalt.err (!%p3372_p2)
}
  0xae   :  { %s3376_s19 = scalar_lea.vmem %s48_s27, 128  ;;  %p3381_p4 = scmp.lt.s32.totalorder %s48_s27, %s48_s27 }
  0xaf   :  { %p3377_p3 = scmp.ne.s32.totalorder %s48_s27, %s3376_s19  ;;  %p3382_p5 = scmp.lt.s32.totalorder %s3376_s19, %s3376_s19 }
  0xb1   :  { %p3383_p6 = por %p3382_p5, %p3381_p4 }
  0xb3   :  { %p3384_p7 = pnand %p3383_p6, %p3377_p3 }
  0xb5   :  { %3387 = shalt.err (!%p3384_p7)
}
  0xb6   :  { %50 = dma.hbm_to_vmem [thread:$0]  %s4504_s28, 128, %s48_s27, [#allocation3]  }
  0xb7   :  { %s4505_s24 = sld [smem:[#allocation41_spill]] }
  0xbd   :  { %s3388_s11 = scalar_lea.hbm %s4505_s24, 128 }
  0xbe   :  { %p3389_p8 = scmp.ne.s32.totalorder %s4505_s24, %s3388_s11  ;;  %p3392_p9 = scmp.lt.u32.totalorder %s3388_s11, %s4505_s24 }
  0xc0   :  { %p3394_p10 = pnand %p3392_p9, %p3389_p8 }
  0xc2   :  { %3397 = shalt.err (!%p3394_p10)
}
  0xc3   :  { %s3398_s26 = scalar_lea.vmem %s68_s29, 128  ;;  %p3403_p12 = scmp.lt.s32.totalorder %s68_s29, %s68_s29 }
  0xc4   :  { %p3399_p11 = scmp.ne.s32.totalorder %s68_s29, %s3398_s26  ;;  %p3404_p13 = scmp.lt.s32.totalorder %s3398_s26, %s3398_s26 }
  0xc6   :  { %p3405_p0 = por %p3404_p13, %p3403_p12 }
  0xc8   :  { %p3406_p1 = pnand %p3405_p0, %p3399_p11 }
  0xca   :  { %3409 = shalt.err (!%p3406_p1)
}
  0xcb   :  { %70 = dma.hbm_to_vmem [thread:$0]  %s4505_s24, 128, %s68_s29, [#allocation6]  }
  0xcc   :  { %s3617_s9 = smov [#allocation10]   ;;  %s3618_s19 = smov [#allocation13]  }
  0xcd   :  { %s87_s6 = sshll.u32 %s3617_s9, 4  ;;  %s109_s30 = sshll.u32 %s3618_s19, 4  ;;  %s88_s6 = int_to_ptr.vmem [resolvable:$true] %s87_s6  ;;  %s110_s30 = int_to_ptr.vmem [resolvable:$true] %s109_s30 }
  0xce   :  { %s4506_s5 = sld [smem:[#allocation43_spill]] }
  0xd4   :  { %s3410_s11 = scalar_lea.hbm %s4506_s5, 128 }
  0xd5   :  { %p3411_p2 = scmp.ne.s32.totalorder %s4506_s5, %s3410_s11  ;;  %p3414_p3 = scmp.lt.u32.totalorder %s3410_s11, %s4506_s5 }
  0xd7   :  { %p3416_p4 = pnand %p3414_p3, %p3411_p2 }
  0xd9   :  { %3419 = shalt.err (!%p3416_p4)
}
  0xda   :  { %s3420_s29 = scalar_lea.vmem %s88_s6, 128  ;;  %p3425_p6 = scmp.lt.s32.totalorder %s88_s6, %s88_s6 }
  0xdb   :  { %p3421_p5 = scmp.ne.s32.totalorder %s88_s6, %s3420_s29  ;;  %p3426_p7 = scmp.lt.s32.totalorder %s3420_s29, %s3420_s29 }
  0xdd   :  { %p3427_p8 = por %p3426_p7, %p3425_p6 }
  0xdf   :  { %p3428_p9 = pnand %p3427_p8, %p3421_p5 }
  0xe1   :  { %3431 = shalt.err (!%p3428_p9)
}
  0xe2   :  { %90 = dma.hbm_to_vmem [thread:$0]  %s4506_s5, 128, %s88_s6, [#allocation9]  }
  0xe3   :  { %s4507_s9 = sld [smem:[#allocation46_spill]] }
  0xe9   :  { %s3432_s19 = scalar_lea.hbm %s4507_s9, 16 }
  0xea   :  { %p3433_p10 = scmp.ne.s32.totalorder %s4507_s9, %s3432_s19  ;;  %p3436_p11 = scmp.lt.u32.totalorder %s3432_s19, %s4507_s9 }
  0xec   :  { %p3438_p12 = pnand %p3436_p11, %p3433_p10 }
  0xee   :  { %3441 = shalt.err (!%p3438_p12)
}
  0xef   :  { %s3442_s4 = scalar_lea.vmem %s110_s30, 16  ;;  %s3446_s8 = scalar_lea.vmem %s110_s30, 32 }
  0xf0   :  { %p3443_p13 = scmp.ne.s32.totalorder %s110_s30, %s3442_s4  ;;  %p3447_p0 = scmp.lt.s32.totalorder %s110_s30, %s110_s30 }
  0xf1   :  { %p3448_p1 = scmp.lt.s32.totalorder %s3446_s8, %s3442_s4 }
  0xf3   :  { %p3449_p2 = por %p3448_p1, %p3447_p0 }
  0xf5   :  { %p3450_p3 = pnand %p3449_p2, %p3443_p13 }
  0xf7   :  { %3453 = shalt.err (!%p3450_p3)
}
  0xf8   :  { %112 = dma.hbm_to_vmem [thread:$0]  %s4507_s9, 16, %s110_s30, [#allocation12]  }
  0xf9   :  { %s3619_s2 = smov [#allocation16]   ;;  %s3620_s24 = smov [#allocation19]  }
  0xfa   :  { %s130_s29 = sshll.u32 %s3619_s2, 4  ;;  %s155_s26 = sshll.u32 %s3620_s24, 4  ;;  %s131_s29 = int_to_ptr.vmem [resolvable:$true] %s130_s29  ;;  %s156_s26 = int_to_ptr.vmem [resolvable:$true] %s155_s26 }
  0xfb   :  { %s3454_s19 = scalar_lea.hbm %s4462_s10, 512 }
  0xfc   :  { %p3455_p4 = scmp.ne.s32.totalorder %s4462_s10, %s3454_s19  ;;  %p3458_p5 = scmp.lt.u32.totalorder %s3454_s19, %s4462_s10 }
  0xfe   :  { %p3460_p6 = pnand %p3458_p5, %p3455_p4 }
 0x100   :  { %3463 = shalt.err (!%p3460_p6)
}
 0x101   :  { %s3464_s30 = scalar_lea.vmem %s131_s29, 512  ;;  %p3469_p8 = scmp.lt.s32.totalorder %s131_s29, %s131_s29 }
 0x102   :  { %p3465_p7 = scmp.ne.s32.totalorder %s131_s29, %s3464_s30  ;;  %p3470_p9 = scmp.lt.s32.totalorder %s3464_s30, %s3464_s30 }
 0x104   :  { %p3471_p10 = por %p3470_p9, %p3469_p8 }
 0x106   :  { %p3472_p11 = pnand %p3471_p10, %p3465_p7 }
 0x108   :  { %3475 = shalt.err (!%p3472_p11)
}
 0x109   :  { %136 = dma.hbm_to_vmem [thread:$0]  %s4462_s10, 512, %s131_s29, [#allocation15], %s3613_s7, %s3613_s7, %s3614_s1  }
 0x10a   :  { %s3476_s5 = scalar_lea.hbm %s4465_s13, 16 }
 0x10b   :  { %p3477_p12 = scmp.ne.s32.totalorder %s4465_s13, %s3476_s5  ;;  %p3480_p13 = scmp.lt.u32.totalorder %s3476_s5, %s4465_s13 }
 0x10d   :  { %p3482_p0 = pnand %p3480_p13, %p3477_p12 }
 0x10f   :  { %3485 = shalt.err (!%p3482_p0)
}
 0x110   :  { %s3486_s19 = scalar_lea.vmem %s156_s26, 16  ;;  %s3490_s3 = scalar_lea.vmem %s156_s26, 32 }
 0x111   :  { %p3487_p1 = scmp.ne.s32.totalorder %s156_s26, %s3486_s19  ;;  %p3491_p2 = scmp.lt.s32.totalorder %s156_s26, %s156_s26 }
 0x112   :  { %p3492_p3 = scmp.lt.s32.totalorder %s3490_s3, %s3486_s19 }
 0x114   :  { %p3493_p4 = por %p3492_p3, %p3491_p2 }
 0x116   :  { %p3494_p5 = pnand %p3493_p4, %p3487_p1 }
 0x118   :  { %3497 = shalt.err (!%p3494_p5)
}
 0x119   :  { %158 = dma.hbm_to_vmem [thread:$0]  %s4465_s13, 16, %s156_s26, [#allocation18]  }
 0x11a   :  { %s3621_s14 = smov [#allocation22]   ;;  %s3622_s0 = smov [#allocation25]  }
 0x11b   :  { %s179_s11 = sshll.u32 %s3621_s14, 4  ;;  %s208_s30 = sshll.u32 %s3622_s0, 4  ;;  %s180_s11 = int_to_ptr.vmem [resolvable:$true] %s179_s11  ;;  %s209_s30 = int_to_ptr.vmem [resolvable:$true] %s208_s30 }
 0x11c   :  { %s3498_s8 = scalar_lea.hbm %s4468_s16, 16 }
 0x11d   :  { %p3499_p6 = scmp.ne.s32.totalorder %s4468_s16, %s3498_s8  ;;  %p3502_p7 = scmp.lt.u32.totalorder %s3498_s8, %s4468_s16 }
 0x11f   :  { %p3504_p8 = pnand %p3502_p7, %p3499_p6 }
 0x121   :  { %3507 = shalt.err (!%p3504_p8)
}
 0x122   :  { %s3508_s13 = scalar_lea.vmem %s180_s11, 16  ;;  %s3512_s26 = scalar_lea.vmem %s180_s11, 32 }
 0x123   :  { %p3509_p9 = scmp.ne.s32.totalorder %s180_s11, %s3508_s13  ;;  %p3513_p10 = scmp.lt.s32.totalorder %s180_s11, %s180_s11 }
 0x124   :  { %p3514_p11 = scmp.lt.s32.totalorder %s3512_s26, %s3508_s13 }
 0x126   :  { %p3515_p12 = por %p3514_p11, %p3513_p10 }
 0x128   :  { %p3516_p13 = pnand %p3515_p12, %p3509_p9 }
 0x12a   :  { %3519 = shalt.err (!%p3516_p13)
}
 0x12b   :  { %182 = dma.hbm_to_vmem [thread:$0]  %s4468_s16, 16, %s180_s11, [#allocation21]  }
 0x12c   :  { %s3520_s10 = scalar_lea.hbm %s4474_s22, 512 }
 0x12d   :  { %p3521_p0 = scmp.ne.s32.totalorder %s4474_s22, %s3520_s10  ;;  %p3524_p1 = scmp.lt.u32.totalorder %s3520_s10, %s4474_s22 }
 0x12f   :  { %p3526_p2 = pnand %p3524_p1, %p3521_p0 }
 0x131   :  { %3529 = shalt.err (!%p3526_p2)
}
 0x132   :  { %s3530_s4 = scalar_lea.vmem %s209_s30, 512  ;;  %p3535_p4 = scmp.lt.s32.totalorder %s209_s30, %s209_s30 }
 0x133   :  { %p3531_p3 = scmp.ne.s32.totalorder %s209_s30, %s3530_s4  ;;  %p3536_p5 = scmp.lt.s32.totalorder %s3530_s4, %s3530_s4 }
 0x135   :  { %p3537_p6 = por %p3536_p5, %p3535_p4 }
 0x137   :  { %p3538_p7 = pnand %p3537_p6, %p3531_p3 }
 0x139   :  { %3541 = shalt.err (!%p3538_p7)
}
 0x13a   :  { %214 = dma.hbm_to_vmem [thread:$0]  %s4474_s22, 512, %s209_s30, [#allocation24], %s3613_s7, %s3613_s7, %s3614_s1  }
 0x13b   :  { %3586 = dma.done.wait [#allocation3], 128  }
 0x13c   :  { %3587 = vsyncadd [#allocation3], 4294967168 }
 0x13d   :  { %3588 = dma.done.wait [#allocation6], 256  }
 0x13e   :  { %3589 = vsyncadd [#allocation6], 4294967040 }
 0x13f   :  { %3590 = dma.done.wait [#allocation9], 256  }
 0x140   :  { %3591 = vsyncadd [#allocation9], 4294967040 }
 0x141   :  { %3592 = dma.done.wait [#allocation12], 144  }
 0x142   :  { %3593 = vsyncadd [#allocation12], 4294967152 }
 0x143   :  { %3594 = dma.done.wait [#allocation15], 528  }
 0x144   :  { %3595 = vsyncadd [#allocation15], 4294966768 }
 0x145   :  { %3596 = dma.done.wait [#allocation18], 32  }
 0x146   :  { %3597 = vsyncadd [#allocation18], 4294967264 }
 0x147   :  { %3598 = dma.done.wait [#allocation21], 528  }
 0x148   :  { %3599 = vsyncadd [#allocation21], 4294966768 }
 0x149   :  { %3600 = dma.done.wait [#allocation24], 1024  }
 0x14a   :  { %3601 = vsyncadd [#allocation24], 4294966272  ;;  %v3623_v0 = vmov 0.0|0.0   ;;  %vm3624_vm0 = vmmov 0   ;;  %v3625_v1 = vmov 0.0   ;;  %s4508_s1 = sld [smem:[#allocation45_spill]] }
 0x14b   :  { %3020 = vmatprep.subr.bf16.mxu0 %v3623_v0  ;;  %2704 = vmatprep.mubr.msk.f32.mxu0 %vm3624_vm0, %v3625_v1  ;;  %v278_v8 = vld [vmem:[#allocation16] sm:$0xff]  ;;  %s4509_s27 = sld [smem:[#allocation47_spill]]  ;;  %v279_v11 = vld [vmem:[#allocation16 + $0x8] sm:$0xff]  ;;  %vm380_vm1 = vcmask 261120   ;;  %v280_v20 = vld [vmem:[#allocation16 + $0x10] sm:$0xff]  ;;  %vm455_vm2 = vcmask 523264  }
 0x14c   :  { %3026 = vmatprep.subr.bf16.mxu1 %v3623_v0  ;;  %2723 = vmatprep.mubr.msk.f32.mxu1 %vm3624_vm0, %v3625_v1  ;;  %v3994_v16 = vld [vmem:[#allocation10] sm:$0xff]  ;;  %v3996_v17 = vpack.c.bf16 %v279_v11, %v278_v8  ;;  %v281_v21 = vld [vmem:[#allocation16 + $0x18] sm:$0xff]  ;;  %v285_v32 = vld [vmem:[%s4464_s12 + $0x18] sm:$0xff]  ;;  %vm676_vm3 = vcmask 64512   ;;  %vm836_vm4 = vcmask 1045504   ;;  %vm832_vm5 = vcmask 48128  }
 0x14d   :  { %v4012_v23 = vpack.c.bf16 %v281_v21, %v280_v20  ;;  %v4020_v24 = vld [vmem:[#allocation11] sm:$0x3f]  ;;  %v282_v28 = vld [vmem:[%s4464_s12] sm:$0xff]  ;;  %v284_v30 = vld [vmem:[%s4464_s12 + $0x10] sm:$0xff]  ;;  %vm2470_vm6 = vcmask 521216  }
 0x14e   :  { %v283_v29 = vld [vmem:[%s4464_s12 + $0x8] sm:$0xff]  ;;  %v4053_v33 = vpack.c.bf16 %v285_v32, %v284_v30  ;;  %v286_v34 = vld [vmem:[%s4464_s12 + $0x20] sm:$0xff]  ;;  %v288_v37 = vld [vmem:[%s4464_s12 + $0x30] sm:$0xff] }
 0x14f   :  { %v4047_v31 = vpack.c.bf16 %v283_v29, %v282_v28  ;;  %v287_v35 = vld [vmem:[%s4464_s12 + $0x28] sm:$0xff]  ;;  %v289_v38 = vld [vmem:[%s4464_s12 + $0x38] sm:$0xff]  ;;  %v4078_v40 = vld [vmem:[#allocation13] ss:$0 sm:$0xff]  ;;  %s3626_s12 = smov 96  }
 0x150   :  { %v266_v2 = vld [vmem:[%s4508_s1] sm:$0xff]  ;;  %v267_v3 = vld [vmem:[%s4508_s1 + $0x8] sm:$0xff]  ;;  %v268_v4 = vld [vmem:[%s4508_s1 + $0x10] sm:$0xff]  ;;  %v4063_v36 = vpack.c.bf16 %v287_v35, %v286_v34  ;;  %v4073_v39 = vpack.c.bf16 %v289_v38, %v288_v37 }
 0x151   :  { %v3967_v5 = vpack.c.bf16 %v267_v3, %v266_v2  ;;  %v269_v6 = vld [vmem:[%s4508_s1 + $0x18] sm:$0xff]  ;;  %v270_v9 = vld [vmem:[%s4509_s27] sm:$0xff]  ;;  %v271_v10 = vld [vmem:[%s4509_s27 + $0x8] sm:$0xff] }
 0x152   :  { %v3973_v7 = vpack.c.bf16 %v269_v6, %v268_v4  ;;  %v3982_v12 = vpack.c.bf16 %v271_v10, %v270_v9  ;;  %v272_v13 = vld [vmem:[%s4509_s27 + $0x10] sm:$0xff]  ;;  %v273_v14 = vld [vmem:[%s4509_s27 + $0x18] sm:$0xff]  ;;  %v274_v18 = vld [vmem:[%s4509_s27 + $0x20] sm:$0xff] }
 0x153   :  { %3022 = vmatpush3.bf16.msra.mxu0 %v3967_v5  ;;  %v3991_v15 = vpack.c.bf16 %v273_v14, %v272_v13  ;;  %v275_v19 = vld [vmem:[%s4509_s27 + $0x28] sm:$0xff]  ;;  %v276_v25 = vld [vmem:[%s4509_s27 + $0x30] sm:$0xff]  ;;  %v277_v26 = vld [vmem:[%s4509_s27 + $0x38] sm:$0xff] }
 0x154   :  { %3023 = vmatprep.subr.bf16.mxu0 %v3623_v0  ;;  %3028 = vmatpush3.bf16.msra.mxu1 %v3982_v12  ;;  %v4009_v22 = vpack.c.bf16 %v275_v19, %v274_v18  ;;  %v4034_v27 = vpack.c.bf16 %v277_v26, %v276_v25  ;;  %v4082_v45 = vld [vmem:[#allocation17] ss:$0 sm:$0xff]  ;;  %v4090_v50 = vld [vmem:[#allocation14] ss:$0 sm:$0xff]  ;;  %v4093_v54 = vld [vmem:[#allocation2] sm:$0x3f] }
 0x155   :  { %3029 = vmatprep.subr.bf16.mxu1 %v3623_v0  ;;  %v4101_v55 = vld [vmem:[#allocation19] ss:$0 sm:$0xff]  ;;  %v4105_v59 = vld [vmem:[#allocation5] sm:$0x3f]  ;;  %v4120_v62 = vld [vmem:[#allocation8] sm:$0xff] }
 0x156   :  { %v4113_v61 = vld [vmem:[#allocation7] sm:$0xff]  ;;  %v294_v2 = vld [vmem:[%s4467_s15] sm:$0xff]  ;;  %v295_v3 = vld [vmem:[%s4467_s15 + $0x8] sm:$0xff] }
 0x157   :  { %3025 = vmatpush3.bf16.msra.mxu0 %v3973_v7  ;;  %v4134_v4 = vpack.c.bf16 %v295_v3, %v294_v2  ;;  %v296_v6 = vld [vmem:[%s4467_s15 + $0x10] sm:$0xff]  ;;  %v297_v8 = vld [vmem:[%s4467_s15 + $0x18] sm:$0xff]  ;;  %v291_v11 = vld [vmem:[#allocation20 + $0x8] sm:$0xff] }
 0x158   :  { %3038 = vmatprep.subr.bf16.mxu0 %v3623_v0  ;;  %3031 = vmatpush3.bf16.msra.mxu1 %v3991_v15  ;;  %v4144_v9 = vpack.c.bf16 %v297_v8, %v296_v6  ;;  %v290_v10 = vld [vmem:[#allocation20] sm:$0xff]  ;;  %v298_v13 = vld [vmem:[%s4467_s15 + $0x20] sm:$0xff]  ;;  %v299_v18 = vld [vmem:[%s4467_s15 + $0x28] sm:$0xff] }
 0x159   :  { %3032 = vmatprep.subr.bf16.mxu1 %v3623_v0  ;;  %v4149_v14 = vpack.c.bf16 %v291_v11, %v290_v10  ;;  %v292_v19 = vld [vmem:[#allocation20 + $0x10] sm:$0xff]  ;;  %v293_v20 = vld [vmem:[#allocation20 + $0x18] sm:$0xff]  ;;  %v4155_v21 = vpack.c.bf16 %v299_v18, %v298_v13  ;;  %v301_v28 = vld [vmem:[%s4467_s15 + $0x38] sm:$0xff] }
 0x15a   :  { %2705 = vmatmul.mubr.msk.f32.vlgmr.msra.gmra.mrb[0].mxu0 %vm380_vm1, %v3994_v16  ;;  %v4159_v25 = vpack.c.bf16 %v293_v20, %v292_v19  ;;  %v300_v26 = vld [vmem:[%s4467_s15 + $0x30] sm:$0xff]  ;;  %s3627_s15 = smov 32   ;;  %v317_v6 = vld [vmem:[%s4472_s20 + $0x38] sm:$0xff] }
 0x15b   :  { %3040 = vmatpush3.bf16.msra.mxu0 %v3996_v17  ;;  %2734 = vmatprep.mubr.msk.f32.mxu0 %vm3624_vm0, %v3625_v1  ;;  %v4169_v32 = vpack.c.bf16 %v301_v28, %v300_v26  ;;  %v316_v3 = vld [vmem:[%s4472_s20 + $0x30] sm:$0xff]  ;;  %v305_v18 = vld [vmem:[%s4469_s17 + $0x18] sm:$0xff] }
 0x15c   :  { %3041 = vmatprep.subr.bf16.mxu0 %v3623_v0  ;;  %3034 = vmatpush3.bf16.msra.mxu1 %v4009_v22  ;;  %v4231_v8 = vpack.c.bf16 %v317_v6, %v316_v3  ;;  %v304_v13 = vld [vmem:[%s4469_s17 + $0x10] sm:$0xff]  ;;  %v306_v28 = vld [vmem:[#allocation23] sm:$0xff] }
 0x15d   :  { %3035 = vmatprep.subr.bf16.mxu1 %v3623_v0  ;;  %v4250_v19 = vpack.c.bf16 %v305_v18, %v304_v13 }
 0x15f   :  { %3043 = vmatpush3.bf16.msra.mxu0 %v4012_v23 }
 0x160   :  { %3044 = vmatprep.subr.bf16.mxu0 %v3623_v0  ;;  %3037 = vmatpush3.bf16.msra.mxu1 %v4034_v27 }
 0x161   :  { %2756 = vmatprep.subr.mxu1 %v3625_v1 }
 0x162   :  { %2735 = vmatmul.mubr.msk.f32.vlgmr.msra.gmra.mrb[2].mxu0 %vm380_vm1, %v4020_v24 }
 0x163   :  { %2753 = vmatprep.mubr.msk.f32.mxu0 %vm3624_vm0, %v3625_v1  ;;  %3046 = vmatpush3.bf16.msra.mxu0 %v4047_v31 }
 0x164   :  { %3047 = vmatprep.subr.bf16.mxu0 %v3623_v0 }
 0x167   :  { %3049 = vmatpush3.bf16.msra.mxu0 %v4053_v33 }
 0x168   :  { %3050 = vmatprep.subr.bf16.mxu0 %v3623_v0 }
 0x16b   :  { %3052 = vmatpush3.bf16.msra.mxu0 %v4063_v36 }
 0x16c   :  { %3053 = vmatprep.subr.bf16.mxu0 %v3623_v0 }
 0x16f   :  { %3055 = vmatpush3.bf16.msra.mxu0 %v4073_v39 }
 0x170   :  { %3056 = vmatprep.subr.bf16.mxu0 %v3623_v0 }
 0x22d   :  { %v450_v41 = vpop.f32.mrb[0].mxu0 }
 0x22e   :  { %v451_v42 = vadd.f32 %v4078_v40, %v450_v41  ;;  %v2706_v43 = vpop.f32.mrb[1].mxu0  ;;  %v302_v41 = vld [vmem:[%s4469_s17] sm:$0xff] }
 0x230   :  { %v454_v44 = vmax.f32 %v451_v42, 0.0 }
 0x232   :  { %2724 = vmatmul.mubr.msk.f32.vlgmr.msra.gmra.mrb[0].mxu1 %vm455_vm2, %v454_v44 }
 0x233   :  { %2758 = vmatprep.mubr.msk.f32.mxu1 %vm3624_vm0, %v3625_v1 }
 0x235   :  { %v598_v46 = vpop.f32.mrb[2].mxu0 }
 0x236   :  { %v599_v47 = vadd.f32 %v4082_v45, %v598_v46  ;;  %v2736_v48 = vpop.f32.mrb[3].mxu0 }
 0x237   :  { %v310_v48 = vld [vmem:[%s4472_s20] sm:$0xff] }
 0x238   :  { %v602_v49 = vmax.f32 %v599_v47, 0.0 }
 0x23a   :  { %2754 = vmatmul.mubr.msk.f32.vlgmr.msra.gmra.mrb[4].mxu0 %vm455_vm2, %v602_v49  ;;  %v311_v49 = vld [vmem:[%s4472_s20 + $0x8] sm:$0xff] }
 0x23b   :  { %2792 = vmatprep.mubr.msk.f32.mxu0 %vm3624_vm0, %v3625_v1  ;;  %3058 = vmatpush3.bf16.msra.mxu0 %v4134_v4 }
 0x23c   :  { %3059 = vmatprep.subr.bf16.mxu0 %v3623_v0 }
 0x23f   :  { %3061 = vmatpush3.bf16.msra.mxu0 %v4144_v9 }
 0x240   :  { %3062 = vmatprep.subr.bf16.mxu0 %v3623_v0 }
 0x243   :  { %3064 = vmatpush3.bf16.msra.mxu0 %v4155_v21 }
 0x244   :  { %3065 = vmatprep.subr.bf16.mxu0 %v3623_v0 }
 0x247   :  { %3067 = vmatpush3.bf16.msra.mxu0 %v4169_v32 }
 0x248   :  { %3080 = vmatprep.subr.bf16.mxu0 %v3623_v0 }
 0x305   :  { %v525_v51 = vpop.f32.mrb[0].mxu1 }
 0x306   :  { %v526_v52 = vadd.f32 %v4090_v50, %v525_v51  ;;  %v2725_v53 = vpop.f32.mrb[1].mxu1  ;;  %v4198_v51 = vpack.c.bf16 %v311_v49, %v310_v48  ;;  %v320_v48 = vld [vmem:[#allocation25 + $0x10] sm:$0xff]  ;;  %v321_v49 = vld [vmem:[#allocation25 + $0x18] sm:$0xff] }
 0x307   :  { %v312_v53 = vld [vmem:[%s4472_s20 + $0x10] sm:$0xff] }
 0x308   :  { %751 = vrot.lane.b32.xlu0 %v526_v52, %s3626_s12  ;;  %2757 = vmatpush3.msra.mxu1 %v526_v52 }
 0x309   :  { %2759 = vmatmul.mubr.msk.f32.vlgmr.msra.gmra.mrb[2].mxu1 %vm676_vm3, %v4093_v54  ;;  %2761 = vmatprep.subr.mxu1 %v3625_v1 }
 0x30a   :  { %2763 = vmatprep.mubr.msk.f32.mxu1 %vm3624_vm0, %v3625_v1 }
 0x30d   :  { %v672_v56 = vpop.f32.mrb[4].mxu0 }
 0x30e   :  { %v673_v57 = vadd.f32 %v4101_v55, %v672_v56  ;;  %v2755_v58 = vpop.f32.mrb[5].mxu0  ;;  %v313_v56 = vld [vmem:[%s4472_s20 + $0x18] sm:$0xff] }
 0x30f   :  { %v4209_v58 = vpack.c.bf16 %v313_v56, %v312_v53  ;;  %v4283_v56 = vld [vmem:[%s4473_s21] ss:$0 sm:$0xff] }
 0x310   :  { %910 = vrot.lane.b32.xlu0 %v673_v57, %s3626_s12 }
 0x37a   :  { %v752_v60 = vpop.permute.xlu0 %751 }
 0x37b   :  { %2762 = vmatpush3.msra.mxu1 %v752_v60  ;;  %v314_v60 = vld [vmem:[%s4472_s20 + $0x20] sm:$0xff] }
 0x37c   :  { %2764 = vmatmul.mubr.msk.f32.vlgmr.msra.gmra.mrb[4].mxu1 %vm676_vm3, %v4105_v59  ;;  %2766 = vmatprep.subr.mxu1 %v3625_v1 }
 0x37d   :  { %2767 = vmatpush3.msk.msra.mxu1 %vm836_vm4, %v673_v57  ;;  %2768 = vmatprep.mubr.msk.f32.mxu1 %vm3624_vm0, %v3625_v1 }
 0x37e   :  { %2771 = vmatprep.subr.mxu1 %v3625_v1 }
 0x380   :  { %2769 = vmatmul.mubr.msk.f32.vlgmr.msra.gmra.mrb[6].mxu1 %vm832_vm5, %v4113_v61 }
 0x381   :  { %2773 = vmatprep.mubr.msk.f32.mxu1 %vm3624_vm0, %v3625_v1 }
 0x382   :  { %v911_v63 = vpop.permute.xlu0 %910 }
 0x383   :  { %2772 = vmatpush3.msk.msra.mxu1 %vm836_vm4, %v911_v63  ;;  %v315_v63 = vld [vmem:[%s4472_s20 + $0x28] sm:$0xff] }
 0x384   :  { %2774 = vmatmul.mubr.msk.f32.vlgmr.msra.gmra.mrb[8].mxu1 %vm832_vm5, %v4120_v62  ;;  %3068 = vmatprep.subr.bf16.mxu1 %v3623_v0  ;;  %v4221_v2 = vpack.c.bf16 %v315_v63, %v314_v60 }
 0x385   :  { %2803 = vmatprep.mubr.msk.f32.mxu1 %vm3624_vm0, %v3625_v1  ;;  %3070 = vmatpush3.bf16.msra.mxu1 %v4149_v14 }
 0x386   :  { %3071 = vmatprep.subr.bf16.mxu1 %v3623_v0 }
 0x389   :  { %3073 = vmatpush3.bf16.msra.mxu1 %v4159_v25 }
 0x38a   :  { %3074 = vmatprep.subr.bf16.mxu1 %v3623_v0 }
 0x38c   :  { %2804 = vmatmul.mubr.msk.f32.vlgmr.msra.gmra.mrb[10].mxu1 %vm380_vm1, %v4020_v24  ;;  %v303_v24 = vld [vmem:[%s4469_s17 + $0x8] sm:$0xff] }
 0x38d   :  { %2814 = vmatprep.mubr.msk.f32.mxu1 %vm3624_vm0, %v3625_v1  ;;  %v4187_v42 = vpack.c.bf16 %v303_v24, %v302_v41 }
 0x38f   :  { %3076 = vmatpush3.bf16.msra.mxu1 %v4187_v42 }
 0x390   :  { %3077 = vmatprep.subr.bf16.mxu1 %v3623_v0 }
 0x393   :  { %3079 = vmatpush3.bf16.msra.mxu1 %v4250_v19 }
 0x394   :  { %3092 = vmatprep.subr.bf16.mxu1 %v3623_v0 }
 0x3dc   :  { %v746_v29 = vpop.f32.mrb[2].mxu1 }
 0x3dd   :  { %v2760_v30 = vpop.f32.mrb[3].mxu1 }
 0x44f   :  { %v823_v34 = vpop.f32.mrb[4].mxu1 }
 0x450   :  { %828 = vrot.lane.b32.xlu1 %v823_v34, %s3627_s15  ;;  %v2765_v35 = vpop.f32.mrb[5].mxu1 }
 0x453   :  { %v906_v37 = vpop.f32.mrb[6].mxu1 }
 0x454   :  { %v2770_v38 = vpop.f32.mrb[7].mxu1 }
 0x455   :  { %v309_v38 = vld [vmem:[#allocation23 + $0x18] sm:$0xff] }
 0x457   :  { %v983_v43 = vpop.f32.mrb[8].mxu1 }
 0x458   :  { %988 = vrot.lane.b32.xlu1 %v983_v43, %s3627_s15  ;;  %v2775_v44 = vpop.f32.mrb[9].mxu1 }
 0x459   :  { %v318_v44 = vld [vmem:[#allocation25] sm:$0xff] }
 0x45f   :  { %v1131_v46 = vpop.f32.mrb[10].mxu1 }
 0x460   :  { %v2805_v47 = vpop.f32.mrb[11].mxu1 }
 0x4c2   :  { %v829_v52 = vpop.permute.xlu1 %828 }
 0x4c3   :  { %v831_v57 = vsel %vm380_vm1, %v746_v29, %v829_v52  ;;  %v307_v29 = vld [vmem:[#allocation23 + $0x8] sm:$0xff]  ;;  %v4276_v52 = vpack.c.bf16 %v321_v49, %v320_v48 }
 0x4c4   :  { %2793 = vmatmul.mubr.msk.f32.vlgmr.msra.gmra.mrb[6].mxu0 %vm455_vm2, %v831_v57  ;;  %v4257_v34 = vpack.c.bf16 %v307_v29, %v306_v28 }
 0x4c5   :  { %3082 = vmatpush3.bf16.msra.mxu0 %v4198_v51  ;;  %2833 = vmatprep.mubr.msk.f32.mxu0 %vm3624_vm0, %v3625_v1 }
 0x4c6   :  { %3083 = vmatprep.subr.bf16.mxu0 %v3623_v0 }
 0x4c9   :  { %3085 = vmatpush3.bf16.msra.mxu0 %v4209_v58 }
 0x4ca   :  { %3086 = vmatprep.subr.bf16.mxu0 %v3623_v0  ;;  %v989_v10 = vpop.permute.xlu1 %988 }
 0x4cb   :  { %v991_v11 = vsel %vm380_vm1, %v906_v37, %v989_v10  ;;  %v308_v37 = vld [vmem:[#allocation23 + $0x10] sm:$0xff] }
 0x4cc   :  { %v4261_v41 = vpack.c.bf16 %v309_v38, %v308_v37 }
 0x4cd   :  { %3088 = vmatpush3.bf16.msra.mxu0 %v4221_v2 }
 0x4ce   :  { %3089 = vmatprep.subr.bf16.mxu0 %v3623_v0 }
 0x4d1   :  { %3091 = vmatpush3.bf16.msra.mxu0 %v4231_v8 }
 0x4d2   :  { %3104 = vmatprep.subr.bf16.mxu0 %v3623_v0 }
 0x4d4   :  { %2834 = vmatmul.mubr.msk.f32.vlgmr.msra.gmra.mrb[8].mxu0 %vm455_vm2, %v991_v11 }
 0x4d5   :  { %3106 = vmatpush3.bf16.msra.mxu0 %v3967_v5  ;;  %2866 = vmatprep.mubr.msk.f32.mxu0 %vm3624_vm0, %v3625_v1  ;;  %v4254_v5 = vld [vmem:[#allocation22] ss:$0 sm:$0xff] }
 0x4d6   :  { %3107 = vmatprep.subr.bf16.mxu0 %v3623_v0 }
 0x4d9   :  { %3109 = vmatpush3.bf16.msra.mxu0 %v3973_v7 }
 0x4da   :  { %3122 = vmatprep.subr.bf16.mxu0 %v3623_v0 }
 0x597   :  { %v1061_v20 = vpop.f32.mrb[6].mxu0 }
 0x598   :  { %v1132_v7 = vadd.f32 %v1131_v46, %v1061_v20  ;;  %v2794_v26 = vpop.f32.mrb[7].mxu0  ;;  %v319_v46 = vld [vmem:[#allocation25 + $0x8] sm:$0xff] }
 0x599   :  { %v4272_v47 = vpack.c.bf16 %v319_v46, %v318_v44 }
 0x59a   :  { %v1135_v30 = vadd.f32 %v4254_v5, %v1132_v7 }
 0x59c   :  { %v1136_v35 = vmax.f32 %v1135_v30, 0.0 }
 0x59e   :  { %2815 = vmatmul.mubr.msk.f32.vlgmr.msra.gmra.mrb[12].mxu1 %vm380_vm1, %v1136_v35 }
 0x59f   :  { %3094 = vmatpush3.bf16.msra.mxu1 %v4257_v34  ;;  %2844 = vmatprep.mubr.msk.f32.mxu1 %vm3624_vm0, %v3625_v1 }
 0x5a0   :  { %3095 = vmatprep.subr.bf16.mxu1 %v3623_v0 }
 0x5a3   :  { %3097 = vmatpush3.bf16.msra.mxu1 %v4261_v41 }
 0x5a4   :  { %3098 = vmatprep.subr.bf16.mxu1 %v3623_v0 }
 0x5a6   :  { %2845 = vmatmul.mubr.msk.f32.vlgmr.msra.gmra.mrb[14].mxu1 %vm380_vm1, %v3994_v16 }
 0x5a7   :  { %v1279_v24 = vpop.f32.mrb[8].mxu0  ;;  %2855 = vmatprep.mubr.msk.f32.mxu1 %vm3624_vm0, %v3625_v1  ;;  %3100 = vmatpush3.bf16.msra.mxu1 %v4272_v47 }
 0x5a8   :  { %v2835_v43 = vpop.f32.mrb[9].mxu0  ;;  %3101 = vmatprep.subr.bf16.mxu1 %v3623_v0 }
 0x5ab   :  { %3103 = vmatpush3.bf16.msra.mxu1 %v4276_v52 }
 0x5ac   :  { %3110 = vmatprep.subr.bf16.mxu1 %v3623_v0 }
 0x671   :  { %v1206_v16 = vpop.f32.mrb[12].mxu1 }
 0x672   :  { %v2816_v53 = vpop.f32.mrb[13].mxu1 }
 0x679   :  { %v1349_v57 = vpop.f32.mrb[14].mxu1 }
 0x67a   :  { %v1350_v60 = vadd.f32 %v1349_v57, %v1279_v24  ;;  %v2846_v63 = vpop.f32.mrb[15].mxu1 }
 0x67c   :  { %v1353_v3 = vadd.f32 %v4283_v56, %v1350_v60 }
 0x67e   :  { %v1354_v6 = vmax.f32 %v1353_v3, 0.0 }
 0x680   :  { %2856 = vmatmul.mubr.msk.f32.vlgmr.msra.gmra.mrb[16].mxu1 %vm380_vm1, %v1354_v6 }
 0x681   :  { %3112 = vmatpush3.bf16.msra.mxu1 %v3982_v12  ;;  %2885 = vmatprep.mubr.msk.f32.mxu1 %vm3624_vm0, %v3625_v1  ;;  %v4300_v12 = vld [vmem:[%s4475_s23] ss:$0 sm:$0xff] }
 0x682   :  { %3113 = vmatprep.subr.bf16.mxu1 %v3623_v0 }
 0x685   :  { %3115 = vmatpush3.bf16.msra.mxu1 %v3991_v15 }
 0x686   :  { %3116 = vmatprep.subr.bf16.mxu1 %v3623_v0 }
 0x689   :  { %3118 = vmatpush3.bf16.msra.mxu1 %v4009_v22  ;;  %v4314_v22 = vld [vmem:[%s4470_s18] ss:$0 sm:$0xff]  ;;  %s3628_s18 = smov [#allocation27]  }
 0x68a   :  { %3119 = vmatprep.subr.bf16.mxu1 %v3623_v0  ;;  %s2488_s23 = sshll.u32 %s3628_s18, 4  ;;  %s2489_s23 = int_to_ptr.vmem [resolvable:$true] %s2488_s23 }
 0x68b   :  { %p3547_p9 = scmp.lt.s32.totalorder %s2489_s23, %s2489_s23 }
 0x68d   :  { %3121 = vmatpush3.bf16.msra.mxu1 %v4034_v27  ;;  %v4318_v27 = vadd.f32 %v4314_v22, %v1206_v16 }
 0x68e   :  { %2918 = vmatprep.subr.mxu1 %v3625_v1 }
 0x753   :  { %v1424_v10 = vpop.f32.mrb[16].mxu1 }
 0x754   :  { %v4303_v11 = vadd.f32 %v4300_v12, %v1424_v10  ;;  %v2857_v15 = vpop.f32.mrb[17].mxu1 }
 0x756   :  { %2867 = vmatmul.mubr.msk.f32.vlgmr.msra.gmra.mrb[10].mxu0 %vm380_vm1, %v4303_v11 }
 0x757   :  { %3124 = vmatpush3.bf16.msra.mxu0 %v3996_v17  ;;  %2896 = vmatprep.mubr.msk.f32.mxu0 %vm3624_vm0, %v3625_v1 }
 0x758   :  { %3125 = vmatprep.subr.bf16.mxu0 %v3623_v0 }
 0x75b   :  { %3127 = vmatpush3.bf16.msra.mxu0 %v4012_v23 }
 0x75c   :  { %3128 = vmatprep.subr.bf16.mxu0 %v3623_v0 }
 0x75e   :  { %2897 = vmatmul.mubr.msk.f32.vlgmr.msra.gmra.mrb[12].mxu0 %vm380_vm1, %v4318_v27 }
 0x75f   :  { %3130 = vmatpush3.bf16.msra.mxu0 %v4047_v31  ;;  %2915 = vmatprep.mubr.msk.f32.mxu0 %vm3624_vm0, %v3625_v1 }
 0x760   :  { %3131 = vmatprep.subr.bf16.mxu0 %v3623_v0 }
 0x763   :  { %3133 = vmatpush3.bf16.msra.mxu0 %v4053_v33 }
 0x764   :  { %3134 = vmatprep.subr.bf16.mxu0 %v3623_v0 }
 0x767   :  { %3136 = vmatpush3.bf16.msra.mxu0 %v4063_v36 }
 0x768   :  { %3137 = vmatprep.subr.bf16.mxu0 %v3623_v0 }
 0x76b   :  { %3139 = vmatpush3.bf16.msra.mxu0 %v4073_v39 }
 0x76c   :  { %3140 = vmatprep.subr.bf16.mxu0 %v3623_v0 }
 0x829   :  { %v1497_v17 = vpop.f32.mrb[10].mxu0 }
 0x82a   :  { %v1498_v23 = vadd.f32 %v4078_v40, %v1497_v17  ;;  %v2868_v31 = vpop.f32.mrb[11].mxu0 }
 0x82c   :  { %v1501_v13 = vmax.f32 %v1498_v23, 0.0 }
 0x82e   :  { %2886 = vmatmul.mubr.msk.f32.vlgmr.msra.gmra.mrb[18].mxu1 %vm455_vm2, %v1501_v13 }
 0x82f   :  { %2920 = vmatprep.mubr.msk.f32.mxu1 %vm3624_vm0, %v3625_v1 }
 0x831   :  { %v1644_v33 = vpop.f32.mrb[12].mxu0 }
 0x832   :  { %v1645_v18 = vadd.f32 %v4082_v45, %v1644_v33  ;;  %v2898_v36 = vpop.f32.mrb[13].mxu0 }
 0x834   :  { %v1648_v20 = vmax.f32 %v1645_v18, 0.0 }
 0x836   :  { %2916 = vmatmul.mubr.msk.f32.vlgmr.msra.gmra.mrb[14].mxu0 %vm455_vm2, %v1648_v20 }
 0x837   :  { %3142 = vmatpush3.bf16.msra.mxu0 %v4134_v4  ;;  %2954 = vmatprep.mubr.msk.f32.mxu0 %vm3624_vm0, %v3625_v1 }
 0x838   :  { %3143 = vmatprep.subr.bf16.mxu0 %v3623_v0 }
 0x83b   :  { %3145 = vmatpush3.bf16.msra.mxu0 %v4144_v9 }
 0x83c   :  { %3146 = vmatprep.subr.bf16.mxu0 %v3623_v0 }
 0x83f   :  { %3148 = vmatpush3.bf16.msra.mxu0 %v4155_v21 }
 0x840   :  { %3149 = vmatprep.subr.bf16.mxu0 %v3623_v0 }
 0x843   :  { %3151 = vmatpush3.bf16.msra.mxu0 %v4169_v32 }
 0x844   :  { %3164 = vmatprep.subr.bf16.mxu0 %v3623_v0 }
 0x901   :  { %v1571_v39 = vpop.f32.mrb[18].mxu1 }
 0x902   :  { %v1572_v40 = vadd.f32 %v4090_v50, %v1571_v39  ;;  %v2887_v45 = vpop.f32.mrb[19].mxu1 }
 0x904   :  { %1793 = vrot.lane.b32.xlu0 %v1572_v40, %s3626_s12  ;;  %2919 = vmatpush3.msra.mxu1 %v1572_v40 }
 0x905   :  { %2921 = vmatmul.mubr.msk.f32.vlgmr.msra.gmra.mrb[20].mxu1 %vm676_vm3, %v4093_v54  ;;  %2923 = vmatprep.subr.mxu1 %v3625_v1 }
 0x906   :  { %2925 = vmatprep.mubr.msk.f32.mxu1 %vm3624_vm0, %v3625_v1 }
 0x909   :  { %v1718_v4 = vpop.f32.mrb[14].mxu0 }
 0x90a   :  { %v1719_v9 = vadd.f32 %v4101_v55, %v1718_v4  ;;  %v2917_v21 = vpop.f32.mrb[15].mxu0 }
 0x90c   :  { %1944 = vrot.lane.b32.xlu1 %v1719_v9, %s3626_s12  ;;  %s3542_s12 = scalar_lea.vmem %s2489_s23, 128 }
 0x90d   :  { %p3543_p8 = scmp.ne.s32.totalorder %s2489_s23, %s3542_s12  ;;  %p3548_p10 = scmp.lt.s32.totalorder %s3542_s12, %s3542_s12 }
 0x90f   :  { %p3549_p11 = por %p3548_p10, %p3547_p9 }
 0x911   :  { %p3550_p12 = pnand %p3549_p11, %p3543_p8 }
 0x976   :  { %v1794_v32 = vpop.permute.xlu0 %1793 }
 0x977   :  { %2924 = vmatpush3.msra.mxu1 %v1794_v32 }
 0x978   :  { %2926 = vmatmul.mubr.msk.f32.vlgmr.msra.gmra.mrb[22].mxu1 %vm676_vm3, %v4105_v59  ;;  %2928 = vmatprep.subr.mxu1 %v3625_v1 }
 0x979   :  { %2929 = vmatpush3.msk.msra.mxu1 %vm836_vm4, %v1719_v9  ;;  %2930 = vmatprep.mubr.msk.f32.mxu1 %vm3624_vm0, %v3625_v1 }
 0x97a   :  { %2933 = vmatprep.subr.mxu1 %v3625_v1 }
 0x97c   :  { %2931 = vmatmul.mubr.msk.f32.vlgmr.msra.gmra.mrb[24].mxu1 %vm832_vm5, %v4113_v61 }
 0x97d   :  { %2935 = vmatprep.mubr.msk.f32.mxu1 %vm3624_vm0, %v3625_v1 }
 0x97e   :  { %v1945_v50 = vpop.permute.xlu1 %1944 }
 0x97f   :  { %2934 = vmatpush3.msk.msra.mxu1 %vm836_vm4, %v1945_v50 }
 0x980   :  { %3152 = vmatprep.subr.bf16.mxu1 %v3623_v0  ;;  %2936 = vmatmul.mubr.msk.f32.vlgmr.msra.gmra.mrb[26].mxu1 %vm832_vm5, %v4120_v62 }
 0x981   :  { %3154 = vmatpush3.bf16.msra.mxu1 %v4149_v14  ;;  %2965 = vmatprep.mubr.msk.f32.mxu1 %vm3624_vm0, %v3625_v1 }
 0x982   :  { %3155 = vmatprep.subr.bf16.mxu1 %v3623_v0 }
 0x985   :  { %3157 = vmatpush3.bf16.msra.mxu1 %v4159_v25 }
 0x986   :  { %3158 = vmatprep.subr.bf16.mxu1 %v3623_v0 }
 0x988   :  { %2966 = vmatmul.mubr.msk.f32.vlgmr.msra.gmra.mrb[28].mxu1 %vm380_vm1, %v4318_v27 }
 0x989   :  { %3160 = vmatpush3.bf16.msra.mxu1 %v4187_v42  ;;  %2976 = vmatprep.mubr.msk.f32.mxu1 %vm3624_vm0, %v3625_v1 }
 0x98a   :  { %3161 = vmatprep.subr.bf16.mxu1 %v3623_v0 }
 0x98d   :  { %3163 = vmatpush3.bf16.msra.mxu1 %v4250_v19 }
 0x98e   :  { %3176 = vmatprep.subr.bf16.mxu1 %v3623_v0 }
 0x9d8   :  { %v1788_v54 = vpop.f32.mrb[20].mxu1 }
 0x9d9   :  { %v2922_v55 = vpop.f32.mrb[21].mxu1 }
 0xa4b   :  { %v1862_v59 = vpop.f32.mrb[22].mxu1 }
 0xa4c   :  { %1867 = vrot.lane.b32.xlu0 %v1862_v59, %s3627_s15  ;;  %v2927_v61 = vpop.f32.mrb[23].mxu1 }
 0xa4f   :  { %v1940_v62 = vpop.f32.mrb[24].mxu1 }
 0xa50   :  { %v2932_v14 = vpop.f32.mrb[25].mxu1 }
 0xa53   :  { %v2014_v25 = vpop.f32.mrb[26].mxu1 }
 0xa54   :  { %v2937_v7 = vpop.f32.mrb[27].mxu1  ;;  %2019 = vrot.lane.b32.xlu1 %v2014_v25, %s3627_s15 }
 0xa5b   :  { %v2162_v42 = vpop.f32.mrb[28].mxu1 }
 0xa5c   :  { %v2967_v26 = vpop.f32.mrb[29].mxu1 }
 0xabe   :  { %v1868_v28 = vpop.permute.xlu0 %1867 }
 0xabf   :  { %v1870_v29 = vsel %vm380_vm1, %v1788_v54, %v1868_v28 }
 0xac0   :  { %2955 = vmatmul.mubr.msk.f32.vlgmr.msra.gmra.mrb[16].mxu0 %vm455_vm2, %v1870_v29 }
 0xac1   :  { %3166 = vmatpush3.bf16.msra.mxu0 %v4198_v51  ;;  %2995 = vmatprep.mubr.msk.f32.mxu0 %vm3624_vm0, %v3625_v1 }
 0xac2   :  { %3167 = vmatprep.subr.bf16.mxu0 %v3623_v0 }
 0xac5   :  { %3169 = vmatpush3.bf16.msra.mxu0 %v4209_v58 }
 0xac6   :  { %3170 = vmatprep.subr.bf16.mxu0 %v3623_v0  ;;  %v2020_v19 = vpop.permute.xlu1 %2019 }
 0xac7   :  { %v2022_v30 = vsel %vm380_vm1, %v1940_v62, %v2020_v19 }
 0xac9   :  { %3172 = vmatpush3.bf16.msra.mxu0 %v4221_v2 }
 0xaca   :  { %3173 = vmatprep.subr.bf16.mxu0 %v3623_v0 }
 0xacd   :  { %3175 = vmatpush3.bf16.msra.mxu0 %v4231_v8 }
 0xad0   :  { %2996 = vmatmul.mubr.msk.f32.vlgmr.msra.gmra.mrb[18].mxu0 %vm455_vm2, %v2022_v30 }
 0xb93   :  { %v2092_v51 = vpop.f32.mrb[16].mxu0 }
 0xb94   :  { %v2163_v35 = vadd.f32 %v2162_v42, %v2092_v51  ;;  %v2956_v37 = vpop.f32.mrb[17].mxu0 }
 0xb96   :  { %v2166_v38 = vadd.f32 %v4254_v5, %v2163_v35 }
 0xb98   :  { %v2167_v24 = vmax.f32 %v2166_v38, 0.0 }
 0xb9a   :  { %2977 = vmatmul.mubr.msk.f32.vlgmr.msra.gmra.mrb[30].mxu1 %vm380_vm1, %v2167_v24 }
 0xb9b   :  { %3178 = vmatpush3.bf16.msra.mxu1 %v4257_v34  ;;  %3006 = vmatprep.mubr.msk.f32.mxu1 %vm3624_vm0, %v3625_v1 }
 0xb9c   :  { %3179 = vmatprep.subr.bf16.mxu1 %v3623_v0 }
 0xb9f   :  { %3181 = vmatpush3.bf16.msra.mxu1 %v4261_v41 }
 0xba0   :  { %3182 = vmatprep.subr.bf16.mxu1 %v3623_v0 }
 0xba2   :  { %3007 = vmatmul.mubr.msk.f32.vlgmr.msra.gmra.mrb[32].mxu1 %vm380_vm1, %v4303_v11 }
 0xba3   :  { %v2310_v58 = vpop.f32.mrb[18].mxu0  ;;  %3184 = vmatpush3.bf16.msra.mxu1 %v4272_v47  ;;  %3017 = vmatprep.mubr.msk.f32.mxu1 %vm3624_vm0, %v3625_v1 }
 0xba4   :  { %v2997_v2 = vpop.f32.mrb[19].mxu0  ;;  %3185 = vmatprep.subr.bf16.mxu1 %v3623_v0 }
 0xba7   :  { %3187 = vmatpush3.bf16.msra.mxu1 %v4276_v52 }
 0xc6d   :  { %v2237_v8 = vpop.f32.mrb[30].mxu1 }
 0xc6e   :  { %v2238_v5 = vadd.f32 %v4314_v22, %v2237_v8  ;;  %v2978_v34 = vpop.f32.mrb[31].mxu1 }
 0xc70   :  { %2466 = vrot.lane.b32.xlu1 %v2238_v5, %s3627_s15 }
 0xc75   :  { %v2380_v41 = vpop.f32.mrb[32].mxu1 }
 0xc76   :  { %v2381_v43 = vadd.f32 %v2380_v41, %v2310_v58  ;;  %v3008_v44 = vpop.f32.mrb[33].mxu1 }
 0xc78   :  { %v2384_v46 = vadd.f32 %v4283_v56, %v2381_v43 }
 0xc7a   :  { %v2385_v47 = vmax.f32 %v2384_v46, 0.0 }
 0xc7c   :  { %3018 = vmatmul.mubr.msk.f32.vlgmr.msra.gmra.mrb[34].mxu1 %vm380_vm1, %v2385_v47 }
 0xce2   :  { %v2467_v1 = vpop.permute.xlu1 %2466 }
 0xce3   :  { %v2469_v0 = vsel %vm380_vm1, %v4318_v27, %v2467_v1 }
 0xce4   :  { %2471 = vst.msk [vmem:[#allocation27] sm:$0x3f] %vm2470_vm6, %v2469_v0 }
 0xce5   :  { %3553 = shalt.err (!%p3550_p12)
}
 0xce6   :  { %s3554_s0 = scalar_lea.hbm %s4477_s25, 128 }
 0xce7   :  { %p3555_p13 = scmp.ne.s32.totalorder %s4477_s25, %s3554_s0  ;;  %p3558_p0 = scmp.lt.u32.totalorder %s3554_s0, %s4477_s25 }
 0xce9   :  { %p3560_p1 = pnand %p3558_p0, %p3555_p13 }
 0xceb   :  { %3563 = shalt.err (!%p3560_p1)
}
 0xcec   :  { %2491 = dma.vmem_to_hbm [thread:$0]  %s2489_s23, 128, %s4477_s25, [#allocation28]  }
 0xced   :  { %s3629_s1 = smov [#allocation26]  }
 0xcee   :  { %s2478_s30 = sshll.u32 %s3629_s1, 4  ;;  %s2479_s30 = int_to_ptr.vmem [resolvable:$true] %s2478_s30 }
 0xcef   :  { %s3564_s8 = scalar_lea.vmem %s2479_s30, 128  ;;  %p3569_p3 = scmp.lt.s32.totalorder %s2479_s30, %s2479_s30 }
 0xcf0   :  { %p3565_p2 = scmp.ne.s32.totalorder %s2479_s30, %s3564_s8  ;;  %p3570_p4 = scmp.lt.s32.totalorder %s3564_s8, %s3564_s8 }
 0xcf2   :  { %p3571_p5 = por %p3570_p4, %p3569_p3 }
 0xcf4   :  { %p3572_p6 = pnand %p3571_p5, %p3565_p2 }
 0xd4f   :  { %v2455_v48 = vpop.f32.mrb[34].mxu1 }
 0xd50   :  { %v2456_v49 = vadd.f32 %v4300_v12, %v2455_v48  ;;  %v3019_v52 = vpop.f32.mrb[35].mxu1 }
 0xd52   :  { %2460 = vrot.lane.b32.xlu0 %v2456_v49, %s3627_s15 }
 0xdc4   :  { %v2461_v16 = vpop.permute.xlu0 %2460 }
 0xdc5   :  { %v2463_v53 = vsel %vm380_vm1, %v4303_v11, %v2461_v16 }
 0xdc6   :  { %2464 = vst.msk [vmem:[#allocation26] sm:$0xff] %vm455_vm2, %v2463_v53 }
 0xdc7   :  { %3575 = shalt.err (!%p3572_p6)
}
 0xdc8   :  { %s4510_s5 = sld [smem:[#allocation49_spill]] }
 0xdce   :  { %s3576_s15 = scalar_lea.hbm %s4510_s5, 128 }
 0xdcf   :  { %p3577_p7 = scmp.ne.s32.totalorder %s4510_s5, %s3576_s15  ;;  %p3580_p8 = scmp.lt.u32.totalorder %s3576_s15, %s4510_s5 }
 0xdd1   :  { %p3582_p9 = pnand %p3580_p8, %p3577_p7 }
 0xdd3   :  { %3585 = shalt.err (!%p3582_p9)
}
 0xdd4   :  { %2481 = dma.vmem_to_hbm [thread:$0]  %s2479_s30, 128, %s4510_s5, [#allocation4]  }
 0xdd5   :  { %3602 = dma.done.wait [#allocation4], 128  }
 0xdd6   :  { %3603 = vsyncadd [#allocation4], 4294967168 }
 0xdd7   :  { %3604 = dma.done.wait [#allocation28], 128  }
 0xdd8   :  { %3605 = vsyncadd [#allocation28], 4294967168 }
 0xdd9   :  { %2498 = vsyncpa [#allocation3], 1 }
 0xdda   :  { %2499 = vsyncpa [#allocation6], 1 }
 0xddb   :  { %2500 = vsyncpa [#allocation9], 1 }
 0xddc   :  { %2501 = vsyncpa [#allocation12], 1 }
 0xddd   :  { %2502 = vsyncpa [#allocation15], 1 }
 0xdde   :  { %2503 = vsyncpa [#allocation18], 1 }
 0xddf   :  { %2504 = vsyncpa [#allocation21], 1 }
 0xde0   :  { %2505 = vsyncpa [#allocation24], 1 }
 0xde1   :  { %2506 = vsyncpa [#allocation4], 1 }
 0xde2   :  { %2507 = vsyncpa [#allocation28], 1 }

</bundles_post_ra>
